<compile_context>
chip_gen: v5e
topology: v5e:2x2
jax: 0.10.0
libtpu: 0.0.40
codegen_flags: <defaults>
</compile_context>

<pallas_src>
import functools

import numpy as np

import jax
import jax.numpy as jnp
from jax.experimental import pallas as pl
from jax.experimental.pallas import tpu as pltpu

EPS = 1e-8            # ε in the reference
LRELU_SLOPE = 0.2
MXU_DTYPE = jnp.bfloat16   # MXU operand dtype; accumulation stays f32.


# ----------------------------------------------------------------------------
# small host-side helpers
# ----------------------------------------------------------------------------
def _round_up(x, m):
    return (x + m - 1) // m * m


def _up2_matrix(n):
    """(2n, n) bilinear x2 interpolation matrix, PyTorch align_corners=False."""
    out_n = 2 * n
    src = np.maximum((np.arange(out_n, dtype=np.float64) + 0.5) / 2.0 - 0.5, 0.0)
    i0 = np.floor(src).astype(np.int64)
    i1 = np.minimum(i0 + 1, n - 1)
    w1 = src - i0
    u = np.zeros((out_n, n), np.float64)
    np.add.at(u, (np.arange(out_n), i0), 1.0 - w1)
    np.add.at(u, (np.arange(out_n), i1), w1)
    return u.astype(np.float32)


def _conv_masks(h, w):
    """(9, H*W) f32 validity masks for the 9 taps of a zero-padded 3x3 conv."""
    m = np.zeros((9, h, w), np.float32)
    for ky in range(3):
        for kx in range(3):
            dy, dx = ky - 1, kx - 1
            rs = np.arange(h) + dy
            cs = np.arange(w) + dx
            m[ky * 3 + kx] = (((rs >= 0) & (rs < h)).astype(np.float32)[:, None]
                              * ((cs >= 0) & (cs < w)).astype(np.float32)[None, :])
    return m.reshape(9, h * w)


# ----------------------------------------------------------------------------
# fused kernel: [x2 up] -> (mod 3x3 conv -> demod -> +noise -> LReLU) x2
#               -> ToRGB 1x1 mod conv [+ residual] [-> x2 up]
# One grid step == one batch sample; everything stays in VMEM / vregs.
# ----------------------------------------------------------------------------
def _make_fused_kernel(shifts, n, up_in, up_rgb, has_residual, mxu_dtype):
    def kernel(*refs):
        it = iter(refs)
        x_ref = next(it)                         # (1, ICp, n_in)   f32
        u1_ref = next(it) if up_in else None     # (n_in, N)        bf16
        masks_ref = next(it)                     # (9, N)           f32
        noise_ref = next(it)                     # (1, 1, N)        f32
        s1_ref = next(it)                        # (1, ICp, 1)      style1 + 1
        d1_ref = next(it)                        # (1, OCp, 1)      demod 1
        s2_ref = next(it)                        # (1, OCp, 1)      style2 + 1
        d2_ref = next(it)                        # (1, OCp, 1)      demod 2
        srgb_ref = next(it)                      # (1, OCp, 1)      styleRGB + 1
        n1w_ref = next(it)                       # (OCp, 1)
        n1b_ref = next(it)                       # (OCp, 1)
        n2w_ref = next(it)                       # (OCp, 1)
        n2b_ref = next(it)                       # (OCp, 1)
        w1_ref = next(it)                        # (OCp, 9*ICp)     bf16
        w2_ref = next(it)                        # (OCp, 9*OCp)     bf16
        wrgb_ref = next(it)                      # (3, OCp)         bf16
        u2_ref = next(it) if up_rgb else None    # (N, 4N)          bf16
        res_ref = next(it) if has_residual else None   # (1, 3, N)  f32
        h_ref = next(it)                         # (1, OCp, N)      out
        rgb_ref = next(it)                       # (1, 3, N or 4N)  out

        noise = noise_ref[0]                     # (1, N) f32

        def mxu(a, b):                           # bf16 MXU operands, f32 acc
            return jnp.dot(a.astype(mxu_dtype), b.astype(mxu_dtype),
                           preferred_element_type=jnp.float32)

        # --- bilinear x2 of the input: one interpolation-matrix matmul -------
        xf = mxu(x_ref[0], u1_ref[...]) if up_in else x_ref[0]      # (ICp, N)

        # --- (9*C, N) tap slab: 8 static XLU lane rolls + border masks -------
        # Need tap_d[:, j] == xm[:, (j + d) % N]; pltpu.roll follows jnp.roll
        # (out[j] = in[(j - s) % N]) so s = (-d) % N.  Out-of-image wraps are
        # zeroed by the masks; the center tap (d == 0, mask == 1) skips both.
        def tap_stack(xm):
            cols = []
            for t, d in enumerate(shifts):
                if d == 0:
                    cols.append(xm)
                else:
                    cols.append(pltpu.roll(xm, (-d) % n, axis=1)
                                * masks_ref[t:t + 1, :])
            return jnp.concatenate(cols, axis=0)                    # (9*C, N)

        def lrelu(v):
            return jnp.where(v >= 0.0, v, LRELU_SLOPE * v)

        # --- conv1: modulate -> 3x3 conv (ONE matmul) -> demod -> +noise -> act
        hcur = mxu(w1_ref[...], tap_stack(xf * s1_ref[0])) * d1_ref[0]
        hcur = lrelu(hcur + n1w_ref[...] * noise + n1b_ref[...])

        # --- conv2 ------------------------------------------------------------
        hcur = mxu(w2_ref[...], tap_stack(hcur * s2_ref[0])) * d2_ref[0]
        hcur = lrelu(hcur + n2w_ref[...] * noise + n2b_ref[...])
        h_ref[0] = hcur.astype(h_ref.dtype)

        # --- ToRGB: modulated 1x1 conv (no demod) + residual [+ x2 upsample] --
        rgb = mxu(wrgb_ref[...], hcur * srgb_ref[0])                # (3, N)
        if has_residual:
            rgb = rgb + res_ref[0]
        if up_rgb:
            rgb = mxu(rgb, u2_ref[...])                             # (3, 4N)
        rgb_ref[0] = rgb.astype(rgb_ref.dtype)

    return kernel


# ----------------------------------------------------------------------------
# Deterministic synthetic parameters (shapes follow the PyTorch __init__).
# TODO(synk): spectral_norm's running power iteration is not modeled; the
# inference-time noise-conv weight is simply used pre-normalized (sigma of a
# (O,1) 1x1 conv weight == its L2 norm).
# ----------------------------------------------------------------------------
def init_params(key, latent_dim, ichannels, ochannels):
    ks = jax.random.split(key, 13)

    def kaiming(k, shape, fan_in):
        gain = (2.0 / (1.0 + 0.01 ** 2)) ** 0.5   # kaiming_normal_, leaky_relu
        return (gain / (fan_in ** 0.5)) * jax.random.normal(k, shape, jnp.float32)

    p = {}
    # ModConv2D weights stored HWIO.
    p["w1"] = kaiming(ks[0], (3, 3, ichannels, ochannels), ichannels * 9)
    p["w2"] = kaiming(ks[1], (3, 3, ochannels, ochannels), ochannels * 9)
    # style Linear layers, stored (in, out) so  s = style @ W + b
    p["s1_w"] = 0.1 * jax.random.normal(ks[2], (latent_dim, ichannels), jnp.float32)
    p["s1_b"] = 0.1 * jax.random.normal(ks[3], (1, ichannels), jnp.float32)
    p["s2_w"] = 0.1 * jax.random.normal(ks[4], (latent_dim, ochannels), jnp.float32)
    p["s2_b"] = 0.1 * jax.random.normal(ks[5], (1, ochannels), jnp.float32)
    # noise 1x1 convs (spectrally normalized).
    n1 = jax.random.normal(ks[6], (1, ochannels), jnp.float32)
    p["n1_w"] = n1 / jnp.linalg.norm(n1)
    p["n1_b"] = 0.1 * jax.random.normal(ks[7], (1, ochannels), jnp.float32)
    n2 = jax.random.normal(ks[8], (1, ochannels), jnp.float32)
    p["n2_w"] = n2 / jnp.linalg.norm(n2)
    p["n2_b"] = 0.1 * jax.random.normal(ks[9], (1, ochannels), jnp.float32)
    # ToRGB: style Linear (latent -> ochannels) and 1x1 mod-conv (ochannels -> 3).
    p["srgb_w"] = 0.1 * jax.random.normal(ks[10], (latent_dim, ochannels), jnp.float32)
    p["srgb_b"] = 0.1 * jax.random.normal(ks[11], (1, ochannels), jnp.float32)
    p["wrgb"] = kaiming(ks[12], (ochannels, 3), ochannels)   # (I=ochannels, R=3)
    return p


# ----------------------------------------------------------------------------
# Full UpsampleBlock forward (NCHW in / NCHW out, like the PyTorch module).
# ----------------------------------------------------------------------------
def upsample_block_forward(params, x, residual, style, noise,
                           *, upsample=True, upsample_rgb=True):
    f32 = jnp.float32
    x = x.astype(f32)
    b, ic, h0, w0 = x.shape
    h, w = (2 * h0, 2 * w0) if upsample else (h0, w0)
    n0, n = h0 * w0, h * w
    oc = params["w2"].shape[-1]
    icp, ocp = _round_up(ic, 8), _round_up(oc, 8)
    has_residual = residual is not None
    style = style.astype(f32)

    # ---- style-only work hoisted off the kernel's serial MXU chain ----------
    scale1 = style @ params["s1_w"] + params["s1_b"] + 1.0          # (B, IC)
    scale2 = style @ params["s2_w"] + params["s2_b"] + 1.0          # (B, OC)
    srgb = style @ params["srgb_w"] + params["srgb_b"] + 1.0        # (B, OC)
    w1sq = jnp.sum(params["w1"] ** 2, axis=(0, 1))                  # (IC, OC)
    w2sq = jnp.sum(params["w2"] ** 2, axis=(0, 1))                  # (OC, OC)
    d1 = jax.lax.rsqrt(scale1 ** 2 @ w1sq + EPS)                    # (B, OC)
    d2 = jax.lax.rsqrt(scale2 ** 2 @ w2sq + EPS)                    # (B, OC)

    def pad_axis(a, target, axis):
        if a.shape[axis] == target:
            return a
        widths = [(0, 0)] * a.ndim
        widths[axis] = (0, target - a.shape[axis])
        return jnp.pad(a, widths)

    def col(v, target):                   # (B, C) -> (B, Cp, 1) f32
        return pad_axis(v.astype(f32), target, 1)[..., None]

    # ---- per-sample lane-dense tensors (pure reshapes, no transposes) -------
    x_in = pad_axis(x.reshape(b, ic, n0), icp, 1)                   # (B, ICp, n0)
    noise_f = noise.astype(f32)[:, :1, :h, :w].reshape(b, 1, n)     # crop like torch
    res_in = (residual.astype(f32).reshape(b, 3, n)
              if has_residual else None)
    s1c, d1c = col(scale1, icp), col(d1, ocp)
    s2c, d2c, srgbc = col(scale2, ocp), col(d2, ocp), col(srgb, ocp)

    # ---- shared constants ----------------------------------------------------
    masks = jnp.asarray(_conv_masks(h, w))                          # (9, N) f32
    shifts = tuple((ky - 1) * w + (kx - 1)
                   for ky in range(3) for kx in range(3))           # static ints
    u1 = (jnp.asarray(np.kron(_up2_matrix(h0), _up2_matrix(w0)).T, dtype=MXU_DTYPE)
          if upsample else None)                                    # (n0, N)
    u2 = (jnp.asarray(np.kron(_up2_matrix(h), _up2_matrix(w)).T, dtype=MXU_DTYPE)
          if upsample_rgb else None)                                # (N, 4N)

    # ---- conv weights, tap-stacked for a single K=9*C MXU contraction -------
    w1p = pad_axis(pad_axis(params["w1"], icp, 2), ocp, 3)
    w1s = (w1p.reshape(9, icp, ocp).transpose(2, 0, 1)
           .reshape(ocp, 9 * icp).astype(MXU_DTYPE))
    w2p = pad_axis(pad_axis(params["w2"], ocp, 2), ocp, 3)
    w2s = (w2p.reshape(9, ocp, ocp).transpose(2, 0, 1)
           .reshape(ocp, 9 * ocp).astype(MXU_DTYPE))
    wrgb = pad_axis(params["wrgb"], ocp, 0).T.astype(MXU_DTYPE)     # (3, OCp)
    n1w = pad_axis(params["n1_w"], ocp, 1).T                        # (OCp, 1)
    n1b = pad_axis(params["n1_b"], ocp, 1).T
    n2w = pad_axis(params["n2_w"], ocp, 1).T
    n2b = pad_axis(params["n2_b"], ocp, 1).T

    # ---- pallas_call: grid over batch, one fully fused step per sample ------
    def shared_spec(a):
        zeros = (0,) * a.ndim
        return pl.BlockSpec(a.shape, lambda i, z=zeros: z)

    def sample_spec(a):
        return pl.BlockSpec((1,) + a.shape[1:], lambda i: (i, 0, 0))

    inputs, in_specs = [], []

    def add(a, spec_fn):
        inputs.append(a)
        in_specs.append(spec_fn(a))

    add(x_in, sample_spec)
    if upsample:
        add(u1, shared_spec)
    add(masks, shared_spec)
    add(noise_f, sample_spec)
    for a in (s1c, d1c, s2c, d2c, srgbc):
        add(a, sample_spec)
    for a in (n1w, n1b, n2w, n2b, w1s, w2s, wrgb):
        add(a, shared_spec)
    if upsample_rgb:
        add(u2, shared_spec)
    if has_residual:
        add(res_in, sample_spec)

    n_rgb = 4 * n if upsample_rgb else n
    kernel = _make_fused_kernel(shifts, n, upsample, upsample_rgb,
                                has_residual, MXU_DTYPE)

    # TODO(synk): for production H*W, tile the lane (pixel) axis over >=2 grid
    # steps (re-derive per-strip masks + 1-row halo for the +-W shifts), switch
    # to a separable two-matmul upsample instead of the Kronecker matrix, and
    # budget tiles against v7x's 64 MiB VMEM with explicit vmem_limit_bytes
    # (raise the xf input to pl.Buffered(3) if input DMA stays exposed).
    h_flat, rgb_flat = pl.pallas_call(
        kernel,
        out_shape=(jax.ShapeDtypeStruct((b, ocp, n), f32),
                   jax.ShapeDtypeStruct((b, 3, n_rgb), f32)),
        grid=(b,),
        in_specs=in_specs,
        out_specs=(pl.BlockSpec((1, ocp, n), lambda i: (i, 0, 0)),
                   pl.BlockSpec((1, 3, n_rgb), lambda i: (i, 0, 0))),
        compiler_params=pltpu.CompilerParams(
            dimension_semantics=("parallel",)),
    )(*inputs)

    h_out = h_flat[:, :oc, :].reshape(b, oc, h, w)
    if upsample_rgb:
        rgb = rgb_flat.reshape(b, 3, 2 * h, 2 * w)
    else:
        rgb = rgb_flat.reshape(b, 3, h, w)
    return h_out, rgb


if __name__ == "__main__":
    B, LATENT, IC, OC, H0, W0 = 2, 32, 4, 8, 8, 8

    key = jax.random.PRNGKey(0)
    kp, kx, kr, ks, kn = jax.random.split(key, 5)
    params = init_params(kp, LATENT, IC, OC)

    x = jax.random.normal(kx, (B, IC, H0, W0), jnp.float32)              # NCHW
    residual = jax.random.normal(kr, (B, 3, 2 * H0, 2 * W0), jnp.float32)
    style = jax.random.normal(ks, (B, LATENT), jnp.float32)
    noise = jax.random.normal(kn, (B, 1, 2 * H0, 2 * W0), jnp.float32)

    fwd = jax.jit(functools.partial(upsample_block_forward,
                                    upsample=True, upsample_rgb=True))
    x_out, rgb = fwd(params, x, residual, style, noise)
    jax.block_until_ready((x_out, rgb))

    assert x_out.shape == (B, OC, 2 * H0, 2 * W0), x_out.shape
    assert rgb.shape == (B, 3, 4 * H0, 4 * W0), rgb.shape
    assert bool(jnp.all(jnp.isfinite(x_out))) and bool(jnp.all(jnp.isfinite(rgb)))
    print("KERNEL_OK")
</pallas_src>

<mosaic_0001>
module attributes {stable_mosaic.version = 11 : i64} {
  func.func @kernel(%arg0: i32, %arg1: memref<1x8x64xf32, #tpu.memory_space<vmem>>, %arg2: memref<64x256xbf16, #tpu.memory_space<vmem>>, %arg3: memref<9x256xf32, #tpu.memory_space<vmem>>, %arg4: memref<1x1x256xf32, #tpu.memory_space<vmem>>, %arg5: memref<1x8x1xf32, #tpu.memory_space<vmem>>, %arg6: memref<1x8x1xf32, #tpu.memory_space<vmem>>, %arg7: memref<1x8x1xf32, #tpu.memory_space<vmem>>, %arg8: memref<1x8x1xf32, #tpu.memory_space<vmem>>, %arg9: memref<1x8x1xf32, #tpu.memory_space<vmem>>, %arg10: memref<8x1xf32, #tpu.memory_space<vmem>>, %arg11: memref<8x1xf32, #tpu.memory_space<vmem>>, %arg12: memref<8x1xf32, #tpu.memory_space<vmem>>, %arg13: memref<8x1xf32, #tpu.memory_space<vmem>>, %arg14: memref<8x72xbf16, #tpu.memory_space<vmem>>, %arg15: memref<8x72xbf16, #tpu.memory_space<vmem>>, %arg16: memref<3x8xbf16, #tpu.memory_space<vmem>>, %arg17: memref<256x1024xbf16, #tpu.memory_space<vmem>>, %arg18: memref<1x3x256xf32, #tpu.memory_space<vmem>>, %arg19: memref<1x8x256xf32, #tpu.memory_space<vmem>>, %arg20: memref<1x3x1024xf32, #tpu.memory_space<vmem>>) attributes {dimension_semantics = [#tpu.dimension_semantics<parallel>], iteration_bounds = array<i64: 2>, scalar_prefetch = 0 : i64, scratch_operands = 0 : i64, tpu.core_type = #tpu.core_type<tc>, window_params = [{transform_indices = @transform_0, window_bounds = array<i64: 1, 8, 64>}, {pipeline_mode = #tpu.pipeline_mode<synchronous>, transform_indices = @transform_1, window_bounds = array<i64: 64, 256>}, {pipeline_mode = #tpu.pipeline_mode<synchronous>, transform_indices = @transform_2, window_bounds = array<i64: 9, 256>}, {transform_indices = @transform_3, window_bounds = array<i64: 1, 1, 256>}, {transform_indices = @transform_4, window_bounds = array<i64: 1, 8, 1>}, {transform_indices = @transform_5, window_bounds = array<i64: 1, 8, 1>}, {transform_indices = @transform_6, window_bounds = array<i64: 1, 8, 1>}, {transform_indices = @transform_7, window_bounds = array<i64: 1, 8, 1>}, {transform_indices = @transform_8, window_bounds = array<i64: 1, 8, 1>}, {pipeline_mode = #tpu.pipeline_mode<synchronous>, transform_indices = @transform_9, window_bounds = array<i64: 8, 1>}, {pipeline_mode = #tpu.pipeline_mode<synchronous>, transform_indices = @transform_10, window_bounds = array<i64: 8, 1>}, {pipeline_mode = #tpu.pipeline_mode<synchronous>, transform_indices = @transform_11, window_bounds = array<i64: 8, 1>}, {pipeline_mode = #tpu.pipeline_mode<synchronous>, transform_indices = @transform_12, window_bounds = array<i64: 8, 1>}, {pipeline_mode = #tpu.pipeline_mode<synchronous>, transform_indices = @transform_13, window_bounds = array<i64: 8, 72>}, {pipeline_mode = #tpu.pipeline_mode<synchronous>, transform_indices = @transform_14, window_bounds = array<i64: 8, 72>}, {pipeline_mode = #tpu.pipeline_mode<synchronous>, transform_indices = @transform_15, window_bounds = array<i64: 3, 8>}, {pipeline_mode = #tpu.pipeline_mode<synchronous>, transform_indices = @transform_16, window_bounds = array<i64: 256, 1024>}, {transform_indices = @transform_17, window_bounds = array<i64: 1, 3, 256>}, {transform_indices = @transform_18, window_bounds = array<i64: 1, 8, 256>}, {transform_indices = @transform_19, window_bounds = array<i64: 1, 3, 1024>}]} {
    %c0 = arith.constant 0 : index
    %c0_0 = arith.constant 0 : index
    %c0_1 = arith.constant 0 : index
    %0 = vector.load %arg4[%c0, %c0_0, %c0_1] : memref<1x1x256xf32, #tpu.memory_space<vmem>>, vector<1x1x256xf32>
    %1 = vector.shape_cast %0 : vector<1x1x256xf32> to vector<1x256xf32>
    %c0_2 = arith.constant 0 : index
    %c0_3 = arith.constant 0 : index
    %c0_4 = arith.constant 0 : index
    %2 = vector.load %arg1[%c0_2, %c0_3, %c0_4] : memref<1x8x64xf32, #tpu.memory_space<vmem>>, vector<1x8x64xf32>
    %3 = vector.shape_cast %2 : vector<1x8x64xf32> to vector<8x64xf32>
    %c0_5 = arith.constant 0 : index
    %c0_6 = arith.constant 0 : index
    %4 = vector.load %arg2[%c0_5, %c0_6] : memref<64x256xbf16, #tpu.memory_space<vmem>>, vector<64x256xbf16>
    %5 = arith.truncf %3 : vector<8x64xf32> to vector<8x64xbf16>
    %cst = arith.constant dense<0.000000e+00> : vector<8x256xf32>
    %6 = tpu.matmul %5, %4, %cst {dimension_numbers = #tpu.dot_dimension_numbers<[1], [0], [0], [1], [0, 0, 1, 1], [], []>} : vector<8x64xbf16>, vector<64x256xbf16>, vector<8x256xf32> -> vector<8x256xf32>
    %c0_7 = arith.constant 0 : index
    %c0_8 = arith.constant 0 : index
    %7 = vector.load %arg14[%c0_7, %c0_8] : memref<8x72xbf16, #tpu.memory_space<vmem>>, vector<8x72xbf16>
    %c0_9 = arith.constant 0 : index
    %c0_10 = arith.constant 0 : index
    %c0_11 = arith.constant 0 : index
    %8 = vector.load %arg5[%c0_9, %c0_10, %c0_11] : memref<1x8x1xf32, #tpu.memory_space<vmem>>, vector<1x8x1xf32>
    %9 = vector.shape_cast %8 : vector<1x8x1xf32> to vector<8x1xf32>
    %10 = vector.broadcast %9 : vector<8x1xf32> to vector<8x256xf32>
    %11 = arith.mulf %6, %10 : vector<8x256xf32>
    %c17_i32 = arith.constant 17 : i32
    %12 = tpu.dynamic_rotate %11 by %c17_i32 dim 1 : vector<8x256xf32>, i32 -> vector<8x256xf32>
    %c0_12 = arith.constant 0 : index
    %c0_13 = arith.constant 0 : index
    %13 = vector.load %arg3[%c0_12, %c0_13] : memref<9x256xf32, #tpu.memory_space<vmem>>, vector<1x256xf32>
    %14 = vector.broadcast %13 : vector<1x256xf32> to vector<8x256xf32>
    %15 = arith.mulf %12, %14 : vector<8x256xf32>
    %c16_i32 = arith.constant 16 : i32
    %16 = tpu.dynamic_rotate %11 by %c16_i32 dim 1 : vector<8x256xf32>, i32 -> vector<8x256xf32>
    %c1 = arith.constant 1 : index
    %c0_14 = arith.constant 0 : index
    %17 = vector.load %arg3[%c1, %c0_14] : memref<9x256xf32, #tpu.memory_space<vmem>>, vector<1x256xf32>
    %18 = vector.broadcast %17 : vector<1x256xf32> to vector<8x256xf32>
    %19 = arith.mulf %16, %18 : vector<8x256xf32>
    %c15_i32 = arith.constant 15 : i32
    %20 = tpu.dynamic_rotate %11 by %c15_i32 dim 1 : vector<8x256xf32>, i32 -> vector<8x256xf32>
    %c2 = arith.constant 2 : index
    %c0_15 = arith.constant 0 : index
    %21 = vector.load %arg3[%c2, %c0_15] : memref<9x256xf32, #tpu.memory_space<vmem>>, vector<1x256xf32>
    %22 = vector.broadcast %21 : vector<1x256xf32> to vector<8x256xf32>
    %23 = arith.mulf %20, %22 : vector<8x256xf32>
    %c1_i32 = arith.constant 1 : i32
    %24 = tpu.dynamic_rotate %11 by %c1_i32 dim 1 : vector<8x256xf32>, i32 -> vector<8x256xf32>
    %c3 = arith.constant 3 : index
    %c0_16 = arith.constant 0 : index
    %25 = vector.load %arg3[%c3, %c0_16] : memref<9x256xf32, #tpu.memory_space<vmem>>, vector<1x256xf32>
    %26 = vector.broadcast %25 : vector<1x256xf32> to vector<8x256xf32>
    %27 = arith.mulf %24, %26 : vector<8x256xf32>
    %c255_i32 = arith.constant 255 : i32
    %28 = tpu.dynamic_rotate %11 by %c255_i32 dim 1 : vector<8x256xf32>, i32 -> vector<8x256xf32>
    %c5 = arith.constant 5 : index
    %c0_17 = arith.constant 0 : index
    %29 = vector.load %arg3[%c5, %c0_17] : memref<9x256xf32, #tpu.memory_space<vmem>>, vector<1x256xf32>
    %30 = vector.broadcast %29 : vector<1x256xf32> to vector<8x256xf32>
    %31 = arith.mulf %28, %30 : vector<8x256xf32>
    %c241_i32 = arith.constant 241 : i32
    %32 = tpu.dynamic_rotate %11 by %c241_i32 dim 1 : vector<8x256xf32>, i32 -> vector<8x256xf32>
    %c6 = arith.constant 6 : index
    %c0_18 = arith.constant 0 : index
    %33 = vector.load %arg3[%c6, %c0_18] : memref<9x256xf32, #tpu.memory_space<vmem>>, vector<1x256xf32>
    %34 = vector.broadcast %33 : vector<1x256xf32> to vector<8x256xf32>
    %35 = arith.mulf %32, %34 : vector<8x256xf32>
    %c240_i32 = arith.constant 240 : i32
    %36 = tpu.dynamic_rotate %11 by %c240_i32 dim 1 : vector<8x256xf32>, i32 -> vector<8x256xf32>
    %c7 = arith.constant 7 : index
    %c0_19 = arith.constant 0 : index
    %37 = vector.load %arg3[%c7, %c0_19] : memref<9x256xf32, #tpu.memory_space<vmem>>, vector<1x256xf32>
    %38 = vector.broadcast %37 : vector<1x256xf32> to vector<8x256xf32>
    %39 = arith.mulf %36, %38 : vector<8x256xf32>
    %c239_i32 = arith.constant 239 : i32
    %40 = tpu.dynamic_rotate %11 by %c239_i32 dim 1 : vector<8x256xf32>, i32 -> vector<8x256xf32>
    %c8 = arith.constant 8 : index
    %c0_20 = arith.constant 0 : index
    %41 = vector.load %arg3[%c8, %c0_20] : memref<9x256xf32, #tpu.memory_space<vmem>>, vector<1x256xf32>
    %42 = vector.broadcast %41 : vector<1x256xf32> to vector<8x256xf32>
    %43 = arith.mulf %40, %42 : vector<8x256xf32>
    %44 = tpu.concatenate %15, %19, %23, %27, %11, %31, %35, %39, %43 in 0 : vector<8x256xf32>, vector<8x256xf32>, vector<8x256xf32>, vector<8x256xf32>, vector<8x256xf32>, vector<8x256xf32>, vector<8x256xf32>, vector<8x256xf32>, vector<8x256xf32> -> vector<72x256xf32>
    %45 = arith.truncf %44 : vector<72x256xf32> to vector<72x256xbf16>
    %cst_21 = arith.constant dense<0.000000e+00> : vector<8x256xf32>
    %46 = tpu.matmul %7, %45, %cst_21 {dimension_numbers = #tpu.dot_dimension_numbers<[1], [0], [0], [1], [0, 0, 1, 1], [], []>} : vector<8x72xbf16>, vector<72x256xbf16>, vector<8x256xf32> -> vector<8x256xf32>
    %c0_22 = arith.constant 0 : index
    %c0_23 = arith.constant 0 : index
    %c0_24 = arith.constant 0 : index
    %47 = vector.load %arg6[%c0_22, %c0_23, %c0_24] : memref<1x8x1xf32, #tpu.memory_space<vmem>>, vector<1x8x1xf32>
    %48 = vector.shape_cast %47 : vector<1x8x1xf32> to vector<8x1xf32>
    %49 = vector.broadcast %48 : vector<8x1xf32> to vector<8x256xf32>
    %50 = arith.mulf %46, %49 : vector<8x256xf32>
    %c0_25 = arith.constant 0 : index
    %c0_26 = arith.constant 0 : index
    %51 = vector.load %arg10[%c0_25, %c0_26] : memref<8x1xf32, #tpu.memory_space<vmem>>, vector<8x1xf32>
    %52 = vector.broadcast %51 : vector<8x1xf32> to vector<8x256xf32>
    %53 = vector.broadcast %1 : vector<1x256xf32> to vector<8x256xf32>
    %54 = arith.mulf %52, %53 : vector<8x256xf32>
    %55 = arith.addf %50, %54 : vector<8x256xf32>
    %c0_27 = arith.constant 0 : index
    %c0_28 = arith.constant 0 : index
    %56 = vector.load %arg11[%c0_27, %c0_28] : memref<8x1xf32, #tpu.memory_space<vmem>>, vector<8x1xf32>
    %57 = vector.broadcast %56 : vector<8x1xf32> to vector<8x256xf32>
    %58 = arith.addf %55, %57 : vector<8x256xf32>
    %cst_29 = arith.constant 0.000000e+00 : f32
    %59 = vector.broadcast %cst_29 : f32 to vector<8x256xf32>
    %60 = arith.cmpf oge, %58, %59 : vector<8x256xf32>
    %cst_30 = arith.constant 2.000000e-01 : f32
    %61 = vector.broadcast %cst_30 : f32 to vector<8x256xf32>
    %62 = arith.mulf %61, %58 : vector<8x256xf32>
    %63 = arith.select %60, %58, %62 : vector<8x256xi1>, vector<8x256xf32>
    %c0_31 = arith.constant 0 : index
    %c0_32 = arith.constant 0 : index
    %64 = vector.load %arg15[%c0_31, %c0_32] : memref<8x72xbf16, #tpu.memory_space<vmem>>, vector<8x72xbf16>
    %c0_33 = arith.constant 0 : index
    %c0_34 = arith.constant 0 : index
    %c0_35 = arith.constant 0 : index
    %65 = vector.load %arg7[%c0_33, %c0_34, %c0_35] : memref<1x8x1xf32, #tpu.memory_space<vmem>>, vector<1x8x1xf32>
    %66 = vector.shape_cast %65 : vector<1x8x1xf32> to vector<8x1xf32>
    %67 = vector.broadcast %66 : vector<8x1xf32> to vector<8x256xf32>
    %68 = arith.mulf %63, %67 : vector<8x256xf32>
    %c17_i32_36 = arith.constant 17 : i32
    %69 = tpu.dynamic_rotate %68 by %c17_i32_36 dim 1 : vector<8x256xf32>, i32 -> vector<8x256xf32>
    %c0_37 = arith.constant 0 : index
    %c0_38 = arith.constant 0 : index
    %70 = vector.load %arg3[%c0_37, %c0_38] : memref<9x256xf32, #tpu.memory_space<vmem>>, vector<1x256xf32>
    %71 = vector.broadcast %70 : vector<1x256xf32> to vector<8x256xf32>
    %72 = arith.mulf %69, %71 : vector<8x256xf32>
    %c16_i32_39 = arith.constant 16 : i32
    %73 = tpu.dynamic_rotate %68 by %c16_i32_39 dim 1 : vector<8x256xf32>, i32 -> vector<8x256xf32>
    %c1_40 = arith.constant 1 : index
    %c0_41 = arith.constant 0 : index
    %74 = vector.load %arg3[%c1_40, %c0_41] : memref<9x256xf32, #tpu.memory_space<vmem>>, vector<1x256xf32>
    %75 = vector.broadcast %74 : vector<1x256xf32> to vector<8x256xf32>
    %76 = arith.mulf %73, %75 : vector<8x256xf32>
    %c15_i32_42 = arith.constant 15 : i32
    %77 = tpu.dynamic_rotate %68 by %c15_i32_42 dim 1 : vector<8x256xf32>, i32 -> vector<8x256xf32>
    %c2_43 = arith.constant 2 : index
    %c0_44 = arith.constant 0 : index
    %78 = vector.load %arg3[%c2_43, %c0_44] : memref<9x256xf32, #tpu.memory_space<vmem>>, vector<1x256xf32>
    %79 = vector.broadcast %78 : vector<1x256xf32> to vector<8x256xf32>
    %80 = arith.mulf %77, %79 : vector<8x256xf32>
    %c1_i32_45 = arith.constant 1 : i32
    %81 = tpu.dynamic_rotate %68 by %c1_i32_45 dim 1 : vector<8x256xf32>, i32 -> vector<8x256xf32>
    %c3_46 = arith.constant 3 : index
    %c0_47 = arith.constant 0 : index
    %82 = vector.load %arg3[%c3_46, %c0_47] : memref<9x256xf32, #tpu.memory_space<vmem>>, vector<1x256xf32>
    %83 = vector.broadcast %82 : vector<1x256xf32> to vector<8x256xf32>
    %84 = arith.mulf %81, %83 : vector<8x256xf32>
    %c255_i32_48 = arith.constant 255 : i32
    %85 = tpu.dynamic_rotate %68 by %c255_i32_48 dim 1 : vector<8x256xf32>, i32 -> vector<8x256xf32>
    %c5_49 = arith.constant 5 : index
    %c0_50 = arith.constant 0 : index
    %86 = vector.load %arg3[%c5_49, %c0_50] : memref<9x256xf32, #tpu.memory_space<vmem>>, vector<1x256xf32>
    %87 = vector.broadcast %86 : vector<1x256xf32> to vector<8x256xf32>
    %88 = arith.mulf %85, %87 : vector<8x256xf32>
    %c241_i32_51 = arith.constant 241 : i32
    %89 = tpu.dynamic_rotate %68 by %c241_i32_51 dim 1 : vector<8x256xf32>, i32 -> vector<8x256xf32>
    %c6_52 = arith.constant 6 : index
    %c0_53 = arith.constant 0 : index
    %90 = vector.load %arg3[%c6_52, %c0_53] : memref<9x256xf32, #tpu.memory_space<vmem>>, vector<1x256xf32>
    %91 = vector.broadcast %90 : vector<1x256xf32> to vector<8x256xf32>
    %92 = arith.mulf %89, %91 : vector<8x256xf32>
    %c240_i32_54 = arith.constant 240 : i32
    %93 = tpu.dynamic_rotate %68 by %c240_i32_54 dim 1 : vector<8x256xf32>, i32 -> vector<8x256xf32>
    %c7_55 = arith.constant 7 : index
    %c0_56 = arith.constant 0 : index
    %94 = vector.load %arg3[%c7_55, %c0_56] : memref<9x256xf32, #tpu.memory_space<vmem>>, vector<1x256xf32>
    %95 = vector.broadcast %94 : vector<1x256xf32> to vector<8x256xf32>
    %96 = arith.mulf %93, %95 : vector<8x256xf32>
    %c239_i32_57 = arith.constant 239 : i32
    %97 = tpu.dynamic_rotate %68 by %c239_i32_57 dim 1 : vector<8x256xf32>, i32 -> vector<8x256xf32>
    %c8_58 = arith.constant 8 : index
    %c0_59 = arith.constant 0 : index
    %98 = vector.load %arg3[%c8_58, %c0_59] : memref<9x256xf32, #tpu.memory_space<vmem>>, vector<1x256xf32>
    %99 = vector.broadcast %98 : vector<1x256xf32> to vector<8x256xf32>
    %100 = arith.mulf %97, %99 : vector<8x256xf32>
    %101 = tpu.concatenate %72, %76, %80, %84, %68, %88, %92, %96, %100 in 0 : vector<8x256xf32>, vector<8x256xf32>, vector<8x256xf32>, vector<8x256xf32>, vector<8x256xf32>, vector<8x256xf32>, vector<8x256xf32>, vector<8x256xf32>, vector<8x256xf32> -> vector<72x256xf32>
    %102 = arith.truncf %101 : vector<72x256xf32> to vector<72x256xbf16>
    %cst_60 = arith.constant dense<0.000000e+00> : vector<8x256xf32>
    %103 = tpu.matmul %64, %102, %cst_60 {dimension_numbers = #tpu.dot_dimension_numbers<[1], [0], [0], [1], [0, 0, 1, 1], [], []>} : vector<8x72xbf16>, vector<72x256xbf16>, vector<8x256xf32> -> vector<8x256xf32>
    %c0_61 = arith.constant 0 : index
    %c0_62 = arith.constant 0 : index
    %c0_63 = arith.constant 0 : index
    %104 = vector.load %arg8[%c0_61, %c0_62, %c0_63] : memref<1x8x1xf32, #tpu.memory_space<vmem>>, vector<1x8x1xf32>
    %105 = vector.shape_cast %104 : vector<1x8x1xf32> to vector<8x1xf32>
    %106 = vector.broadcast %105 : vector<8x1xf32> to vector<8x256xf32>
    %107 = arith.mulf %103, %106 : vector<8x256xf32>
    %c0_64 = arith.constant 0 : index
    %c0_65 = arith.constant 0 : index
    %108 = vector.load %arg12[%c0_64, %c0_65] : memref<8x1xf32, #tpu.memory_space<vmem>>, vector<8x1xf32>
    %109 = vector.broadcast %108 : vector<8x1xf32> to vector<8x256xf32>
    %110 = vector.broadcast %1 : vector<1x256xf32> to vector<8x256xf32>
    %111 = arith.mulf %109, %110 : vector<8x256xf32>
    %112 = arith.addf %107, %111 : vector<8x256xf32>
    %c0_66 = arith.constant 0 : index
    %c0_67 = arith.constant 0 : index
    %113 = vector.load %arg13[%c0_66, %c0_67] : memref<8x1xf32, #tpu.memory_space<vmem>>, vector<8x1xf32>
    %114 = vector.broadcast %113 : vector<8x1xf32> to vector<8x256xf32>
    %115 = arith.addf %112, %114 : vector<8x256xf32>
    %cst_68 = arith.constant 0.000000e+00 : f32
    %116 = vector.broadcast %cst_68 : f32 to vector<8x256xf32>
    %117 = arith.cmpf oge, %115, %116 : vector<8x256xf32>
    %cst_69 = arith.constant 2.000000e-01 : f32
    %118 = vector.broadcast %cst_69 : f32 to vector<8x256xf32>
    %119 = arith.mulf %118, %115 : vector<8x256xf32>
    %120 = arith.select %117, %115, %119 : vector<8x256xi1>, vector<8x256xf32>
    %c0_70 = arith.constant 0 : index
    %c0_71 = arith.constant 0 : index
    %c0_72 = arith.constant 0 : index
    %121 = vector.load %arg19[%c0_70, %c0_71, %c0_72] : memref<1x8x256xf32, #tpu.memory_space<vmem>>, vector<1x8x256xf32>
    %122 = vector.shape_cast %121 : vector<1x8x256xf32> to vector<8x256xf32>
    %123 = vector.shape_cast %120 : vector<8x256xf32> to vector<1x8x256xf32>
    tpu.vector_store %arg19[%c0_70, %c0_71, %c0_72], %123 {strides = array<i32>} : memref<1x8x256xf32, #tpu.memory_space<vmem>>, vector<1x8x256xf32>,
    %c0_73 = arith.constant 0 : index
    %c0_74 = arith.constant 0 : index
    %124 = vector.load %arg16[%c0_73, %c0_74] : memref<3x8xbf16, #tpu.memory_space<vmem>>, vector<3x8xbf16>
    %c0_75 = arith.constant 0 : index
    %c0_76 = arith.constant 0 : index
    %c0_77 = arith.constant 0 : index
    %125 = vector.load %arg9[%c0_75, %c0_76, %c0_77] : memref<1x8x1xf32, #tpu.memory_space<vmem>>, vector<1x8x1xf32>
    %126 = vector.shape_cast %125 : vector<1x8x1xf32> to vector<8x1xf32>
    %127 = vector.broadcast %126 : vector<8x1xf32> to vector<8x256xf32>
    %128 = arith.mulf %120, %127 : vector<8x256xf32>
    %129 = arith.truncf %128 : vector<8x256xf32> to vector<8x256xbf16>
    %cst_78 = arith.constant dense<0.000000e+00> : vector<3x256xf32>
    %130 = tpu.matmul %124, %129, %cst_78 {dimension_numbers = #tpu.dot_dimension_numbers<[1], [0], [0], [1], [0, 0, 1, 1], [], []>} : vector<3x8xbf16>, vector<8x256xbf16>, vector<3x256xf32> -> vector<3x256xf32>
    %c0_79 = arith.constant 0 : index
    %c0_80 = arith.constant 0 : index
    %c0_81 = arith.constant 0 : index
    %131 = vector.load %arg18[%c0_79, %c0_80, %c0_81] : memref<1x3x256xf32, #tpu.memory_space<vmem>>, vector<1x3x256xf32>
    %132 = vector.shape_cast %131 : vector<1x3x256xf32> to vector<3x256xf32>
    %133 = arith.addf %130, %132 : vector<3x256xf32>
    %c0_82 = arith.constant 0 : index
    %c0_83 = arith.constant 0 : index
    %134 = vector.load %arg17[%c0_82, %c0_83] : memref<256x1024xbf16, #tpu.memory_space<vmem>>, vector<256x1024xbf16>
    %135 = arith.truncf %133 : vector<3x256xf32> to vector<3x256xbf16>
    %cst_84 = arith.constant dense<0.000000e+00> : vector<3x1024xf32>
    %136 = tpu.matmul %135, %134, %cst_84 {dimension_numbers = #tpu.dot_dimension_numbers<[1], [0], [0], [1], [0, 0, 1, 1], [], []>} : vector<3x256xbf16>, vector<256x1024xbf16>, vector<3x1024xf32> -> vector<3x1024xf32>
    %c0_85 = arith.constant 0 : index
    %c0_86 = arith.constant 0 : index
    %c0_87 = arith.constant 0 : index
    %137 = vector.load %arg20[%c0_85, %c0_86, %c0_87] : memref<1x3x1024xf32, #tpu.memory_space<vmem>>, vector<1x3x1024xf32>
    %138 = vector.shape_cast %137 : vector<1x3x1024xf32> to vector<3x1024xf32>
    %139 = vector.shape_cast %136 : vector<3x1024xf32> to vector<1x3x1024xf32>
    tpu.vector_store %arg20[%c0_85, %c0_86, %c0_87], %139 {strides = array<i32>} : memref<1x3x1024xf32, #tpu.memory_space<vmem>>, vector<1x3x1024xf32>,
    return
  }
  func.func @transform_0(%arg0: i32) -> (i32, i32, i32) {
    %c0_i32 = arith.constant 0 : i32
    %c0_i32_0 = arith.constant 0 : i32
    %c0_i32_1 = arith.constant 0 : i32
    return %arg0, %c0_i32, %c0_i32_0 : i32, i32, i32
  }
  func.func @transform_1(%arg0: i32) -> (i32, i32) {
    %c0_i32 = arith.constant 0 : i32
    %c0_i32_0 = arith.constant 0 : i32
    %c0_i32_1 = arith.constant 0 : i32
    return %c0_i32, %c0_i32_0 : i32, i32
  }
  func.func @transform_2(%arg0: i32) -> (i32, i32) {
    %c0_i32 = arith.constant 0 : i32
    %c0_i32_0 = arith.constant 0 : i32
    %c0_i32_1 = arith.constant 0 : i32
    return %c0_i32, %c0_i32_0 : i32, i32
  }
  func.func @transform_3(%arg0: i32) -> (i32, i32, i32) {
    %c0_i32 = arith.constant 0 : i32
    %c0_i32_0 = arith.constant 0 : i32
    %c0_i32_1 = arith.constant 0 : i32
    return %arg0, %c0_i32, %c0_i32_0 : i32, i32, i32
  }
  func.func @transform_4(%arg0: i32) -> (i32, i32, i32) {
    %c0_i32 = arith.constant 0 : i32
    %c0_i32_0 = arith.constant 0 : i32
    %c0_i32_1 = arith.constant 0 : i32
    return %arg0, %c0_i32, %c0_i32_0 : i32, i32, i32
  }
  func.func @transform_5(%arg0: i32) -> (i32, i32, i32) {
    %c0_i32 = arith.constant 0 : i32
    %c0_i32_0 = arith.constant 0 : i32
    %c0_i32_1 = arith.constant 0 : i32
    return %arg0, %c0_i32, %c0_i32_0 : i32, i32, i32
  }
  func.func @transform_6(%arg0: i32) -> (i32, i32, i32) {
    %c0_i32 = arith.constant 0 : i32
    %c0_i32_0 = arith.constant 0 : i32
    %c0_i32_1 = arith.constant 0 : i32
    return %arg0, %c0_i32, %c0_i32_0 : i32, i32, i32
  }
  func.func @transform_7(%arg0: i32) -> (i32, i32, i32) {
    %c0_i32 = arith.constant 0 : i32
    %c0_i32_0 = arith.constant 0 : i32
    %c0_i32_1 = arith.constant 0 : i32
    return %arg0, %c0_i32, %c0_i32_0 : i32, i32, i32
  }
  func.func @transform_8(%arg0: i32) -> (i32, i32, i32) {
    %c0_i32 = arith.constant 0 : i32
    %c0_i32_0 = arith.constant 0 : i32
    %c0_i32_1 = arith.constant 0 : i32
    return %arg0, %c0_i32, %c0_i32_0 : i32, i32, i32
  }
  func.func @transform_9(%arg0: i32) -> (i32, i32) {
    %c0_i32 = arith.constant 0 : i32
    %c0_i32_0 = arith.constant 0 : i32
    %c0_i32_1 = arith.constant 0 : i32
    return %c0_i32, %c0_i32_0 : i32, i32
  }
  func.func @transform_10(%arg0: i32) -> (i32, i32) {
    %c0_i32 = arith.constant 0 : i32
    %c0_i32_0 = arith.constant 0 : i32
    %c0_i32_1 = arith.constant 0 : i32
    return %c0_i32, %c0_i32_0 : i32, i32
  }
  func.func @transform_11(%arg0: i32) -> (i32, i32) {
    %c0_i32 = arith.constant 0 : i32
    %c0_i32_0 = arith.constant 0 : i32
    %c0_i32_1 = arith.constant 0 : i32
    return %c0_i32, %c0_i32_0 : i32, i32
  }
  func.func @transform_12(%arg0: i32) -> (i32, i32) {
    %c0_i32 = arith.constant 0 : i32
    %c0_i32_0 = arith.constant 0 : i32
    %c0_i32_1 = arith.constant 0 : i32
    return %c0_i32, %c0_i32_0 : i32, i32
  }
  func.func @transform_13(%arg0: i32) -> (i32, i32) {
    %c0_i32 = arith.constant 0 : i32
    %c0_i32_0 = arith.constant 0 : i32
    %c0_i32_1 = arith.constant 0 : i32
    return %c0_i32, %c0_i32_0 : i32, i32
  }
  func.func @transform_14(%arg0: i32) -> (i32, i32) {
    %c0_i32 = arith.constant 0 : i32
    %c0_i32_0 = arith.constant 0 : i32
    %c0_i32_1 = arith.constant 0 : i32
    return %c0_i32, %c0_i32_0 : i32, i32
  }
  func.func @transform_15(%arg0: i32) -> (i32, i32) {
    %c0_i32 = arith.constant 0 : i32
    %c0_i32_0 = arith.constant 0 : i32
    %c0_i32_1 = arith.constant 0 : i32
    return %c0_i32, %c0_i32_0 : i32, i32
  }
  func.func @transform_16(%arg0: i32) -> (i32, i32) {
    %c0_i32 = arith.constant 0 : i32
    %c0_i32_0 = arith.constant 0 : i32
    %c0_i32_1 = arith.constant 0 : i32
    return %c0_i32, %c0_i32_0 : i32, i32
  }
  func.func @transform_17(%arg0: i32) -> (i32, i32, i32) {
    %c0_i32 = arith.constant 0 : i32
    %c0_i32_0 = arith.constant 0 : i32
    %c0_i32_1 = arith.constant 0 : i32
    return %arg0, %c0_i32, %c0_i32_0 : i32, i32, i32
  }
  func.func @transform_18(%arg0: i32) -> (i32, i32, i32) {
    %c0_i32 = arith.constant 0 : i32
    %c0_i32_0 = arith.constant 0 : i32
    %c0_i32_1 = arith.constant 0 : i32
    return %arg0, %c0_i32, %c0_i32_0 : i32, i32, i32
  }
  func.func @transform_19(%arg0: i32) -> (i32, i32, i32) {
    %c0_i32 = arith.constant 0 : i32
    %c0_i32_0 = arith.constant 0 : i32
    %c0_i32_1 = arith.constant 0 : i32
    return %arg0, %c0_i32, %c0_i32_0 : i32, i32, i32
  }
}

</mosaic_0001>

<bundles_post_ra>
// kernel: upsample_block_forward.1
= control target key start
LH: loop header
LB: loop body
LE: loop exit
PB: predicated region body
PF: predicated region fallthrough
CT: control target
= control target key end

     0   :  { %s3807_s0 = inlined_call_operand.vmem [shape: f32[2,8,64], index: 0, kind: input, shape index: {}]   ;;  %s3808_s1 = inlined_call_operand.vmem [shape: bf16[64,256], index: 1, kind: input, shape index: {}]   ;;  %s3809_s2 = inlined_call_operand.vmem [shape: f32[9,256], index: 2, kind: input, shape index: {}]   ;;  %s3810_s3 = inlined_call_operand.vmem [shape: f32[2,1,256], index: 3, kind: input, shape index: {}]   ;;  %s3811_s4 = inlined_call_operand.vmem [shape: f32[2,8,1], index: 4, kind: input, shape index: {}]   ;;  %s3812_s5 = inlined_call_operand.vmem [shape: f32[2,8,1], index: 5, kind: input, shape index: {}]   ;;  %s3813_s6 = inlined_call_operand.vmem [shape: f32[2,8,1], index: 6, kind: input, shape index: {}]   ;;  %s3814_s7 = inlined_call_operand.vmem [shape: f32[2,8,1], index: 7, kind: input, shape index: {}]   ;;  %s3815_s8 = inlined_call_operand.vmem [shape: f32[2,8,1], index: 8, kind: input, shape index: {}]   ;;  %s3816_s9 = inlined_call_operand.vmem [shape: f32[8,1], index: 9, kind: input, shape index: {}]   ;;  %s3817_s10 = inlined_call_operand.vmem [shape: f32[8,1], index: 10, kind: input, shape index: {}]   ;;  %s3818_s11 = inlined_call_operand.vmem [shape: f32[8,1], index: 11, kind: input, shape index: {}]   ;;  %s3819_s12 = inlined_call_operand.vmem [shape: f32[8,1], index: 12, kind: input, shape index: {}]   ;;  %s3820_s13 = inlined_call_operand.vmem [shape: bf16[8,72], index: 13, kind: input, shape index: {}]   ;;  %s3821_s14 = inlined_call_operand.vmem [shape: bf16[8,72], index: 14, kind: input, shape index: {}]   ;;  %s3822_s15 = inlined_call_operand.vmem [shape: bf16[3,8], index: 15, kind: input, shape index: {}]   ;;  %s3823_s16 = inlined_call_operand.hbm [shape: bf16[256,1024], index: 16, kind: input, shape index: {}]   ;;  %s3824_s17 = inlined_call_operand.vmem [shape: f32[2,3,256], index: 17, kind: input, shape index: {}]   ;;  %s3825_s18 = inlined_call_operand.vmem [shape: f32[2,8,256], index: 18, kind: output, shape index: {0}]   ;;  %s3826_s19 = inlined_call_operand.vmem [shape: f32[2,3,1024], index: 19, kind: output, shape index: {1}]  }
   0x1   :  { %3837 = sst [smem:[#allocation5_spill]] %s3807_s0 }
   0x2   :  { %3838 = sst [smem:[#allocation6_spill]] %s3808_s1 }
   0x3   :  { %3839 = sst [smem:[#allocation7_spill]] %s3809_s2 }
   0x4   :  { %3840 = sst [smem:[#allocation8_spill]] %s3810_s3 }
   0x5   :  { %3841 = sst [smem:[#allocation9_spill]] %s3823_s16 }
   0x6   :  { %25 = vsyncpa [#allocation3], 0  ;;  %s3355_s0 = smov 0  }
   0x7 LB: > { %s3842_s16 = sld [smem:[#allocation9_spill]]  ;;  %s2448_s1 = sadd.s32 4294967295, %s3241_s0   ;;  %s3241_s0 = sphi %s3355_s0, %s31_s0  }
   0x8   : > { %p2450_p0 = scmp.ge.s32.totalorder %s3241_s0, 1  ;;  %p506_p1 = scmp.lt.s32.totalorder %s3241_s0, 3 }
   0x9   : > { %p3176_p2 = scmp.eq.s32.totalorder %s2448_s1, 0  ;;  %s3243_s22 = smov [#allocation2]  }
   0xa   : > { %p507_p3 = pnand %p2450_p0, %p506_p1  ;;  %s546_s2 = sshll.u32 %s3243_s22, 4  ;;  %s547_s2 = int_to_ptr.vmem [resolvable:$true] %s546_s2 }
   0xb   : > { %s3244_s23 = smov 512   ;;  %s3245_s24 = smov 32  }
   0xc   : > { %p3172_p4 = pneg %p507_p3  ;;  %619 = sbr.rel (%p507_p3) target bundleno = 1126 (0x466), region = 92 }
   0xd   : > { %s544_s21 = sshll.u32 %s3842_s16, 4  ;;  %s545_s21 = int_to_ptr.hbm [resolvable:$true] %s544_s21 }
   0xe   : > { %p3173_p5 = pnand %p3176_p2, %p3172_p4 }
  0x10   : > { %3175 = dma.hbm_to_vmem [thread:$0]  (!%p3173_p5), %s545_s21, 16384, %s547_s2, [#allocation3], %s3244_s23, %s3244_s23, %s3245_s24  }
  0x11   : > { %3236 = dma.done.wait (%p3176_p2), [#allocation3], 16384  }
  0x12   : > { %3238 = vsyncadd (%p3176_p2), [#allocation3], 4294950912  ;;  %p709_p6 = scmp.lt.s32.totalorder %s2448_s1, 1  ;;  %v3246_v0 = vmov 0   ;;  %s3843_s27 = sld [smem:[#allocation6_spill]]  ;;  %vm804_vm0 = vcmask 523264   ;;  %v847_v37 = vlaneseq }
  0x13   : > { %3198 = vset.pattern.permute.xlu0 %v3246_v0  ;;  %3200 = vset.pattern.permute.xlu1 %v3246_v0  ;;  %s3844_s16 = sld [smem:[#allocation5_spill]]  ;;  %s3247_s2 = smov 111   ;;  %v1027_v36 = vld [vmem:[%s3816_s9] sm:$0xff]  ;;  %vm986_vm2 = vcmask 1043456   ;;  %vm982_vm10 = vcmask 588800   ;;  %vm1226_vm15 = vcmask 64512  }
  0x14   : > { %s3852_s1 = smov (!%p709_p6, %s2448_s1), 1  ;;  %3199 = vset.pattern.permute.xlu2 %v3246_v0  ;;  %s3248_s23 = smov 113   ;;  %v3470_v39 = vand.u32 127, %v847_v37 }
  0x15   : > { %s3369_s25 = sshll.u32 %s3852_s1, 3  ;;  %s3249_s3 = smov 112  }
  0x16   : > { %s741_s22 = scalar_lea.vmem %s3824_s17, %s3369_s25  ;;  %s720_s24 = scalar_lea.vmem %s3811_s4, %s3369_s25  ;;  %vm960_vm1 = vcmp.lt.s32.totalorder %v3470_v39, 111  ;;  %vm928_vm3 = vcmp.lt.s32.totalorder %v3470_v39, 113  ;;  %vm944_vm4 = vcmp.lt.s32.totalorder %v3470_v39, 112  ;;  %vm912_vm5 = vcmp.lt.s32.totalorder %v3470_v39, 127 }
  0x17   : > { %v1219_v17 = vld [vmem:[%s741_s22] sm:$0x77]  ;;  %s3835_s26 = smov 15   ;;  %s3251_s28 = smov 127   ;;  %vm896_vm6 = vcmp.lt.s32.totalorder %v3470_v39, 1  ;;  %vm880_vm7 = vcmp.lt.s32.totalorder %v3470_v39, 15 }
  0x18   : > { %v2494_v1 = vld [vmem:[%s3843_s27 + $0x30] sm:$0xf]  ;;  %v3039_v2 = vld [vmem:[%s3843_s27 + $0x34] sm:$0xf0]  ;;  %v3038_v3 = vld [vmem:[%s3843_s27 + $0x34] sm:$0xf]  ;;  %s728_s20 = scalar_lea.vmem %s3813_s6, %s3369_s25 }
  0x19   : > { %v2495_v4 = vor.u32 %v3039_v2, %v2494_v1  ;;  %v2496_v5 = vld [vmem:[%s3843_s27 + $0x38] sm:$0xf0]  ;;  %v2486_v6 = vld [vmem:[%s3843_s27 + $0x20] sm:$0xf]  ;;  %v3037_v7 = vld [vmem:[%s3843_s27 + $0x24] sm:$0xf0]  ;;  %s712_s30 = scalar_lea.vmem %s3844_s16, %s3369_s25 }
  0x1a   : > { %v2499_v8 = vor.u32 %v3038_v3, %v2496_v5  ;;  %v3036_v9 = vld [vmem:[%s3843_s27 + $0x24] sm:$0xf]  ;;  %v2488_v10 = vld [vmem:[%s3843_s27 + $0x28] sm:$0xf0]  ;;  %v2487_v11 = vor.u32 %v3037_v7, %v2486_v6  ;;  %v2478_v13 = vld [vmem:[%s3843_s27 + $0x10] sm:$0xf] }
  0x1b   : > { %812 = vmatpush.bf16.msra.mxu0 %v2495_v4  ;;  %v2491_v12 = vor.u32 %v3036_v9, %v2488_v10  ;;  %v3035_v14 = vld [vmem:[%s3843_s27 + $0x14] sm:$0xf0]  ;;  %v3034_v15 = vld [vmem:[%s3843_s27 + $0x14] sm:$0xf]  ;;  %v2480_v16 = vld [vmem:[%s3843_s27 + $0x18] sm:$0xf0] }
  0x1c   : > { %825 = vmatpush.bf16.msra.mxu1 %v2499_v8  ;;  %1221 = vst [vmem:[#allocation1] ss:$2 sm:$0xff] %v1219_v17  ;;  %v835_v18 = vld [vmem:[%s720_s24] sm:$0xff]  ;;  %v2479_v19 = vor.u32 %v3035_v14, %v2478_v13  ;;  %v2483_v20 = vor.u32 %v3034_v15, %v2480_v16  ;;  %v3033_v22 = vld [vmem:[%s3843_s27 + $0x4] sm:$0xf0]  ;;  %s3829_s29 = smov 1  }
  0x1d   : > { %838 = vperm.xlu0 %3198, %v835_v18   ;;  %v2470_v21 = vld [vmem:[%s3843_s27] sm:$0xf]  ;;  %v3032_v23 = vld [vmem:[%s3843_s27 + $0x4] sm:$0xf]  ;;  %v2472_v24 = vld [vmem:[%s3843_s27 + $0x8] sm:$0xf0] }
  0x1e   : > { %v2471_v25 = vor.u32 %v3033_v22, %v2470_v21  ;;  %v754_v26 = vld [vmem:[%s712_s30] sm:$0xff]  ;;  %v2475_v27 = vor.u32 %v3032_v23, %v2472_v24  ;;  %s3831_s16 = smov 16   ;;  %s3833_s30 = smov 17   ;;  %vm849_vm8 = vcmp.lt.s32.totalorder %v3470_v39, 17  ;;  %vm864_vm9 = vcmp.lt.s32.totalorder %v3470_v39, 16 }
  0x1f   : > { %813 = vmatpush.bf16.msra.mxu0 %v2487_v11  ;;  %v763_v28 = vpack.c.bf16 %v754_v26, %v754_v26  ;;  %v1042_v16 = vld [vmem:[%s3817_s10] sm:$0xff]  ;;  %s3846_s24 = sld [smem:[#allocation8_spill]]  ;;  %s3030_s22 = sshll.u32 %s3852_s1, 4 }
  0x20   : > { %826 = vmatpush.bf16.msra.mxu1 %v2491_v12  ;;  %v1056_v39 = vld [vmem:[%s3821_s14] sm:$0xf] }
  0x23   : > { %814 = vmatpush.bf16.msra.mxu0 %v2479_v19 }
  0x24   : > { %827 = vmatpush.bf16.msra.mxu1 %v2483_v20 }
  0x27   : > { %815 = vmatpush.bf16.msra.mxu0 %v2471_v25 }
  0x28   : > { %828 = vmatpush.bf16.msra.mxu1 %v2475_v27 }
  0x2a   : > { %2500 = vmatmul.msk.bf16.vlgmr.msra.gmra.mxu0 %vm804_vm0, %v763_v28 }
  0x2b   : > { %2501 = vmatmul.msk.bf16.vlgmr.msra.gmra.mxu1 %vm804_vm0, %v763_v28 }
  0x8f   : > { %v839_v29 = vpop.permute.xlu0 %838 }
  0xa7   : > { %v817_v30 = vpop.f32.mrf.mxu0 }
  0xa8   : > { %v3431_v31 = vmul.f32 %v839_v29, %v817_v30  ;;  %v830_v32 = vpop.f32.mrf.mxu1  ;;  %v1057_v30 = vld [vmem:[%s728_s20] sm:$0xff]  ;;  %s2456_s20 = sshll.u32 %s3852_s1, 1 }
  0xa9   : > { %v3433_v33 = vmul.f32 %v839_v29, %v830_v32  ;;  %s716_s21 = scalar_lea.vmem %s3846_s24, %s2456_s20  ;;  %s732_s20 = scalar_lea.vmem %s3814_s7, %s3369_s25 }
  0xaa   : > { %956 = vrot.lane.b32.xlu0 %v3431_v31, %s3247_s2 }
  0xab   : > { %926 = vrot.lane.b32.xlu2 %v3433_v33, %s3248_s23  ;;  %958 = vrot.lane.b32.xlu1 %v3433_v33, %s3247_s2 }
  0xaf   : > { %v819_v34 = vpop.f32.mrf.mxu0 }
  0xb0   : > { %v832_v35 = vpop.f32.mrf.mxu1 }
  0xb2   : > { %942 = vrot.lane.b32.xlu0 %v3433_v33, %s3249_s3 }
  0xb3   : > { %940 = vrot.lane.b32.xlu2 %v3431_v31, %s3249_s3  ;;  %924 = vrot.lane.b32.xlu1 %v3431_v31, %s3248_s23 }
  0xba   : > { %876 = vrot.lane.b32.xlu0 %v3431_v31, %s3835_s26 }
  0xbb   : > { %910 = vrot.lane.b32.xlu2 %v3433_v33, %s3251_s28  ;;  %908 = vrot.lane.b32.xlu1 %v3431_v31, %s3251_s28 }
  0xc2   : > { %894 = vrot.lane.b32.xlu0 %v3433_v33, %s3829_s29 }
  0xc3   : > { %892 = vrot.lane.b32.xlu2 %v3431_v31, %s3829_s29  ;;  %878 = vrot.lane.b32.xlu1 %v3433_v33, %s3835_s26  ;;  %s3845_s29 = sld [smem:[#allocation7_spill]]  ;;  %s746_s26 = scalar_lea.vmem %s3825_s18, %s3030_s22 }
  0xc9   : > { %v3475_v40 = vld [vmem:[%s3845_s29 + $0x10] ss:$8 sm:$0x3]  ;;  %v3491_v49 = vld [vmem:[%s3845_s29 + $0x7] ss:$8 sm:$0x3] }
  0xca   : > { %860 = vrot.lane.b32.xlu0 %v3431_v31, %s3831_s16  ;;  %v966_v41 = vperm.slane %v3475_v40, 0  ;;  %v967_v42 = vperm.slane %v3475_v40, 1  ;;  %v3496_v51 = vld [vmem:[%s3845_s29 + $0x6] ss:$8 sm:$0x3]  ;;  %v950_v54 = vperm.slane %v3491_v49, 0 }
  0xcb   : > { %845 = vrot.lane.b32.xlu2 %v3433_v33, %s3833_s30  ;;  %843 = vrot.lane.b32.xlu1 %v3431_v31, %s3833_s30  ;;  %v951_v55 = vperm.slane %v3491_v49, 1  ;;  %v934_v58 = vperm.slane %v3496_v51, 0  ;;  %v935_v59 = vperm.slane %v3496_v51, 1  ;;  %v3525_v6 = vld [vmem:[%s3845_s29 + $0x5] ss:$8 sm:$0x3] }
  0xcc   : > { %v918_v10 = vperm.slane %v3525_v6, 0  ;;  %v919_v11 = vperm.slane %v3525_v6, 1  ;;  %v3548_v20 = vld [vmem:[%s3845_s29 + $0x3] ss:$8 sm:$0x3] }
  0xcd   : > { %v3553_v21 = vld [vmem:[%s3845_s29 + $0x2] ss:$8 sm:$0x3]  ;;  %v902_v24 = vperm.slane %v3548_v20, 0  ;;  %v903_v25 = vperm.slane %v3548_v20, 1 }
  0xce   : > { %v886_v26 = vperm.slane %v3553_v21, 0  ;;  %v887_v27 = vperm.slane %v3553_v21, 1 }
  0xd2   : > { %1030 = vperm.xlu0 %3198, %v1027_v36  }
  0xd3   : > { %862 = vrot.lane.b32.xlu1 %v3433_v33, %s3831_s16  ;;  %s724_s16 = scalar_lea.vmem %s3812_s5, %s3369_s25 }
  0xd4   : > { %v1019_v17 = vld [vmem:[%s724_s16] sm:$0xff]  ;;  %s3847_s16 = smov 15  }
  0xd5   : > { %1022 = vperm.xlu2 %3199, %v1019_v17  }
  0xdb   : > { %1045 = vperm.xlu1 %3200, %v1042_v16  }
  0xdd   : > { %1060 = vperm.xlu2 %3199, %v1057_v30  }
 0x105   : > { %v927_v38 = vpop.permute.xlu2 %926 }
 0x10d   : > { %v941_v50 = vpop.permute.xlu2 %940 }
 0x115   : > { %v911_v9 = vpop.permute.xlu2 %910 }
 0x11c   : > { %v957_v43 = vpop.permute.xlu0 %956 }
 0x11d   : > { %v959_v44 = vpop.permute.xlu1 %958  ;;  %v893_v28 = vpop.permute.xlu2 %892 }
 0x11e   : > { %v961_v45 = vsel %vm960_vm1, %v957_v43, %v959_v44  ;;  %v962_v46 = vsel %vm960_vm1, %v959_v44, %v957_v43 }
 0x11f   : > { %v970_v47 = vmul.f32 %v966_v41, %v961_v45  ;;  %v971_v48 = vmul.f32 %v967_v42, %v962_v46 }
 0x121   : > { %v980_v52 = vpack.c.bf16 %v970_v47, %v970_v47  ;;  %v981_v53 = vpack.c.bf16 %v971_v48, %v971_v48  ;;  %v3586_v47 = vld [vmem:[%s3845_s29] ss:$8 sm:$0x3]  ;;  %v3591_v48 = vld [vmem:[%s3845_s29 + $0x1] ss:$8 sm:$0x3] }
 0x123   : > { %v988_v56 = vsel %vm986_vm2, %v980_v52, 0  ;;  %v991_v57 = vsel %vm986_vm2, %v981_v53, 0  ;;  %v855_v53 = vperm.slane %v3586_v47, 1 }
 0x124   : > { %996 = vmatpush.bf16.msra.mxu2 %v988_v56  ;;  %1009 = vmatpush.bf16.msra.mxu3 %v991_v57  ;;  %v943_v60 = vpop.permute.xlu0 %942  ;;  %v870_v56 = vperm.slane %v3591_v48, 0  ;;  %v871_v57 = vperm.slane %v3591_v48, 1  ;;  %v2709_v48 = vld [vmem:[#allocation2 + $0x180] sm:$0xf] }
 0x125   : > { %v925_v61 = vpop.permute.xlu1 %924  ;;  %v945_v62 = vsel %vm944_vm4, %v941_v50, %v943_v60  ;;  %v946_v63 = vsel %vm944_vm4, %v943_v60, %v941_v50  ;;  %v854_v50 = vperm.slane %v3586_v47, 0  ;;  %v846_v52 = vpop.permute.xlu2 %845  ;;  %v2741_v47 = vld [vmem:[#allocation2 + $0x1c0] sm:$0xf] }
 0x126   : > { %v929_v0 = vsel %vm928_vm3, %v925_v61, %v927_v38  ;;  %v930_v1 = vsel %vm928_vm3, %v927_v38, %v925_v61  ;;  %v954_v2 = vmul.f32 %v950_v54, %v945_v62  ;;  %v955_v3 = vmul.f32 %v951_v55, %v946_v63 }
 0x127   : > { %v938_v4 = vmul.f32 %v934_v58, %v929_v0  ;;  %v939_v5 = vmul.f32 %v935_v59, %v930_v1 }
 0x129   : > { %v978_v7 = vpack.c.bf16 %v954_v2, %v938_v4  ;;  %v979_v8 = vpack.c.bf16 %v955_v3, %v939_v5 }
 0x12b   : > { %997 = vmatpush.bf16.msra.mxu2 %v978_v7  ;;  %1010 = vmatpush.bf16.msra.mxu3 %v979_v8 }
 0x12c   : > { %v877_v12 = vpop.permute.xlu0 %876 }
 0x12d   : > { %v909_v13 = vpop.permute.xlu1 %908 }
 0x12e   : > { %v913_v14 = vsel %vm912_vm5, %v909_v13, %v911_v9  ;;  %v914_v15 = vsel %vm912_vm5, %v911_v9, %v909_v13  ;;  %v834_v9 = vld [vmem:[%s3820_s13] sm:$0xf] }
 0x12f   : > { %v922_v18 = vmul.f32 %v918_v10, %v913_v14  ;;  %v923_v19 = vmul.f32 %v919_v11, %v914_v15  ;;  %v1023_v16 = vpop.permute.xlu2 %1022 }
 0x131   : > { %v976_v22 = vpack.c.bf16 %v922_v18, %v3431_v31  ;;  %v977_v23 = vpack.c.bf16 %v923_v19, %v3433_v33 }
 0x133   : > { %998 = vmatpush.bf16.msra.mxu2 %v976_v22  ;;  %1011 = vmatpush.bf16.msra.mxu3 %v977_v23 }
 0x134   : > { %v895_v29 = vpop.permute.xlu0 %894 }
 0x135   : > { %v879_v31 = vpop.permute.xlu1 %878  ;;  %v897_v32 = vsel %vm896_vm6, %v893_v28, %v895_v29  ;;  %v898_v33 = vsel %vm896_vm6, %v895_v29, %v893_v28 }
 0x136   : > { %v881_v34 = vsel %vm880_vm7, %v877_v12, %v879_v31  ;;  %v882_v35 = vsel %vm880_vm7, %v879_v31, %v877_v12  ;;  %v906_v36 = vmul.f32 %v902_v24, %v898_v33  ;;  %v907_v37 = vmul.f32 %v903_v25, %v897_v32  ;;  %v3624_v12 = vld [vmem:[%s716_s21] sm:$0x3]  ;;  %s3031_s21 = sshll.u32 %s3852_s1, 5 }
 0x137   : > { %v890_v38 = vmul.f32 %v886_v26, %v882_v35  ;;  %v891_v43 = vmul.f32 %v887_v27, %v881_v34  ;;  %v1034_v13 = vperm.slane %v3624_v12, 0  ;;  %v1035_v14 = vperm.slane %v3624_v12, 1  ;;  %v2549_v12 = vld [vmem:[#allocation2 + $0x40] sm:$0xf] }
 0x139   : > { %v974_v44 = vpack.c.bf16 %v906_v36, %v890_v38  ;;  %v975_v45 = vpack.c.bf16 %v907_v37, %v891_v43  ;;  %v1061_v38 = vpop.permute.xlu2 %1060 }
 0x13b   : > { %999 = vmatpush.bf16.msra.mxu2 %v974_v44  ;;  %1012 = vmatpush.bf16.msra.mxu3 %v975_v45 }
 0x13c   : > { %v861_v62 = vpop.permute.xlu0 %860 }
 0x13d   : > { %v844_v46 = vpop.permute.xlu1 %843 }
 0x13e   : > { %v850_v60 = vsel %vm849_vm8, %v844_v46, %v846_v52  ;;  %v851_v61 = vsel %vm849_vm8, %v846_v52, %v844_v46  ;;  %v1174_v52 = vld [vmem:[%s732_s20] sm:$0xff] }
 0x13f   : > { %v858_v2 = vmul.f32 %v854_v50, %v851_v61  ;;  %v859_v3 = vmul.f32 %v855_v53, %v850_v60  ;;  %v1182_v60 = vld [vmem:[%s3818_s11] sm:$0xff] }
 0x144   : > { %v1031_v15 = vpop.permute.xlu0 %1030 }
 0x145   : > { %v863_v63 = vpop.permute.xlu1 %862  ;;  %v1038_v19 = vmul.f32 %v1034_v13, %v1031_v15  ;;  %v1039_v22 = vmul.f32 %v1035_v14, %v1031_v15 }
 0x146   : > { %v865_v0 = vsel %vm864_vm9, %v861_v62, %v863_v63  ;;  %v866_v1 = vsel %vm864_vm9, %v863_v63, %v861_v62  ;;  %v1192_v62 = vld [vmem:[%s3819_s12] sm:$0xff] }
 0x147   : > { %v874_v4 = vmul.f32 %v870_v56, %v866_v1  ;;  %v875_v5 = vmul.f32 %v871_v57, %v865_v0 }
 0x149   : > { %v972_v7 = vpack.c.bf16 %v874_v4, %v858_v2  ;;  %v973_v8 = vpack.c.bf16 %v875_v5, %v859_v3 }
 0x14b   : > { %1000 = vmatpush.bf16.msra.mxu2 %v972_v7  ;;  %1013 = vmatpush.bf16.msra.mxu3 %v973_v8 }
 0x14d   : > { %v1046_v29 = vpop.permute.xlu1 %1045 }
 0x14e   : > { %2509 = vmatmul.msk.bf16.vlgmr.msra.gmra.mxu2 %vm982_vm10, %v834_v9  ;;  %2510 = vmatmul.msk.bf16.vlgmr.msra.gmra.mxu3 %vm982_vm10, %v834_v9 }
 0x1d1   : > { %v1002_v17 = vpop.f32.mrf.mxu2  ;;  %v1015_v18 = vpop.f32.mrf.mxu3 }
 0x1d2   : > { %v1025_v23 = vmul.f32 %v1023_v16, %v1002_v17  ;;  %v1026_v28 = vmul.f32 %v1023_v16, %v1015_v18 }
 0x1d4   : > { %v1040_v30 = vadd.f32 %v1038_v19, %v1025_v23  ;;  %v1041_v31 = vadd.f32 %v1039_v22, %v1026_v28 }
 0x1d6   : > { %v1048_v32 = vadd.f32 %v1046_v29, %v1040_v30  ;;  %v1049_v33 = vadd.f32 %v1046_v29, %v1041_v31 }
 0x1d8   : > { %vm1050_vm11 = vcmp.ge.f32.partialorder %v1048_v32, 0.0  ;;  %vm1051_vm12 = vcmp.ge.f32.partialorder %v1049_v33, 0.0  ;;  %v1052_v34 = vmul.f32 0.2, %v1048_v32  ;;  %v1053_v35 = vmul.f32 0.2, %v1049_v33 }
 0x1d9   : > { %v1004_v36 = vpop.f32.mrf.mxu2  ;;  %v1017_v37 = vpop.f32.mrf.mxu3 }
 0x1da   : > { %v1054_v43 = vsel %vm1050_vm11, %v1048_v32, %v1052_v34  ;;  %v1055_v44 = vsel %vm1051_vm12, %v1049_v33, %v1053_v35 }
 0x1db   : > { %v3632_v45 = vmul.f32 %v1061_v38, %v1054_v43  ;;  %v3634_v46 = vmul.f32 %v1061_v38, %v1055_v44 }
 0x1dd   : > { %1123 = vrot.lane.b32.xlu1 %v3634_v46, %s3247_s2  ;;  %1105 = vrot.lane.b32.xlu2 %v3632_v45, %s3248_s23 }
 0x1de   : > { %1121 = vrot.lane.b32.xlu0 %v3632_v45, %s3247_s2  ;;  %s3848_s2 = smov 1  }
 0x1e5   : > { %1113 = vrot.lane.b32.xlu1 %v3632_v45, %s3249_s3  ;;  %1115 = vrot.lane.b32.xlu2 %v3634_v46, %s3249_s3  ;;  %s3850_s3 = smov 16  }
 0x1e6   : > { %1107 = vrot.lane.b32.xlu0 %v3634_v46, %s3248_s23  ;;  %s3849_s23 = smov 17  }
 0x1ed   : > { %1099 = vrot.lane.b32.xlu1 %v3634_v46, %s3251_s28  ;;  %1081 = vrot.lane.b32.xlu2 %v3632_v45, %s3847_s16 }
 0x1ee   : > { %1097 = vrot.lane.b32.xlu0 %v3632_v45, %s3251_s28 }
 0x1f5   : > { %1089 = vrot.lane.b32.xlu1 %v3632_v45, %s3848_s2  ;;  %1091 = vrot.lane.b32.xlu2 %v3634_v46, %s3848_s2 }
 0x1f6   : > { %1083 = vrot.lane.b32.xlu0 %v3634_v46, %s3847_s16  ;;  %s736_s16 = scalar_lea.vmem %s3815_s8, %s3369_s25 }
 0x1f7   : > { %v1209_v61 = vld [vmem:[%s736_s16] sm:$0xff] }
 0x1fd   : > { %1067 = vrot.lane.b32.xlu1 %v3634_v46, %s3849_s23  ;;  %1073 = vrot.lane.b32.xlu2 %v3632_v45, %s3850_s3 }
 0x1fe   : > { %1065 = vrot.lane.b32.xlu0 %v3632_v45, %s3849_s23  ;;  %s3794_s23 = scalar_lea.vmem %s3826_s19, %s3031_s21 }
 0x205   : > { %1177 = vperm.xlu1 %3200, %v1174_v52   ;;  %1185 = vperm.xlu2 %3199, %v1182_v60  }
 0x206   : > { %1075 = vrot.lane.b32.xlu0 %v3634_v46, %s3850_s3 }
 0x20d   : > { %1212 = vperm.xlu1 %3200, %v1209_v61  }
 0x20e   : > { %1195 = vperm.xlu0 %3198, %v1192_v62  }
 0x237   : > { %v1106_v63 = vpop.permute.xlu2 %1105 }
 0x23f   : > { %v1116_v7 = vpop.permute.xlu2 %1115 }
 0x247   : > { %v1082_v32 = vpop.permute.xlu2 %1081 }
 0x24f   : > { %v1124_v0 = vpop.permute.xlu1 %1123  ;;  %v1092_v35 = vpop.permute.xlu2 %1091 }
 0x250   : > { %v1122_v1 = vpop.permute.xlu0 %1121 }
 0x251   : > { %v1125_v2 = vsel %vm960_vm1, %v1122_v1, %v1124_v0  ;;  %v1126_v3 = vsel %vm960_vm1, %v1124_v0, %v1122_v1 }
 0x252   : > { %v1127_v4 = vmul.f32 %v1125_v2, %v966_v41  ;;  %v1128_v5 = vmul.f32 %v1126_v3, %v967_v42 }
 0x254   : > { %v1137_v8 = vpack.c.bf16 %v1127_v4, %v1127_v4  ;;  %v1138_v9 = vpack.c.bf16 %v1128_v5, %v1128_v5 }
 0x256   : > { %v1143_v15 = vsel %vm986_vm2, %v1137_v8, 0  ;;  %v1146_v16 = vsel %vm986_vm2, %v1138_v9, 0  ;;  %v2965_v8 = vld [vmem:[#allocation2 + $0x380] sm:$0xf] }
 0x257   : > { %1151 = vmatpush.bf16.msrb.mxu0 %v1143_v15  ;;  %1164 = vmatpush.bf16.msrb.mxu1 %v1146_v16  ;;  %v1114_v17 = vpop.permute.xlu1 %1113  ;;  %v1074_v62 = vpop.permute.xlu2 %1073  ;;  %v3156_v9 = vld [vmem:[#allocation2 + $0x39c] sm:$0xf0] }
 0x258   : > { %v1117_v18 = vsel %vm944_vm4, %v1114_v17, %v1116_v7  ;;  %v1118_v19 = vsel %vm944_vm4, %v1116_v7, %v1114_v17  ;;  %v1108_v41 = vpop.permute.xlu0 %1107  ;;  %v2966_v16 = vor.u32 %v3156_v9, %v2965_v8  ;;  %v2677_v17 = vld [vmem:[#allocation2 + $0x140] sm:$0xf] }
 0x259   : > { %v1119_v40 = vmul.f32 %v1117_v18, %v950_v54  ;;  %v1120_v42 = vmul.f32 %v1118_v19, %v951_v55  ;;  %v1109_v22 = vsel %vm928_vm3, %v1106_v63, %v1108_v41  ;;  %v1110_v23 = vsel %vm928_vm3, %v1108_v41, %v1106_v63  ;;  %v3084_v18 = vld [vmem:[#allocation2 + $0x15c] sm:$0xf0] }
 0x25a   : > { %v1111_v28 = vmul.f32 %v1109_v22, %v934_v58  ;;  %v1112_v29 = vmul.f32 %v1110_v23, %v935_v59  ;;  %v2933_v19 = vld [vmem:[#allocation2 + $0x340] sm:$0xf] }
 0x25b   : > { %v3148_v41 = vld [vmem:[#allocation2 + $0x35c] sm:$0xf0] }
 0x25c   : > { %v1135_v30 = vpack.c.bf16 %v1119_v40, %v1111_v28  ;;  %v1136_v31 = vpack.c.bf16 %v1120_v42, %v1112_v29  ;;  %v2678_v40 = vor.u32 %v3084_v18, %v2677_v17  ;;  %v2934_v42 = vor.u32 %v3148_v41, %v2933_v19  ;;  %v2645_v22 = vld [vmem:[#allocation2 + $0x100] sm:$0xf]  ;;  %v2749_v19 = vld [vmem:[#allocation2 + $0x1c8] sm:$0xf]  ;;  %v3152_v41 = vld [vmem:[#allocation2 + $0x384] sm:$0xf] }
 0x25d   : > { %v3076_v23 = vld [vmem:[#allocation2 + $0x11c] sm:$0xf0] }
 0x25e   : > { %1152 = vmatpush.bf16.msrb.mxu0 %v1135_v30  ;;  %1165 = vmatpush.bf16.msrb.mxu1 %v1136_v31  ;;  %v2901_v28 = vld [vmem:[#allocation2 + $0x300] sm:$0xf]  ;;  %v2646_v31 = vor.u32 %v3076_v23, %v2645_v22  ;;  %v3101_v22 = vld [vmem:[#allocation2 + $0x1e4] sm:$0xf0] }
 0x25f   : > { %v1100_v54 = vpop.permute.xlu1 %1099  ;;  %v3140_v29 = vld [vmem:[#allocation2 + $0x31c] sm:$0xf0]  ;;  %v1186_v30 = vpop.permute.xlu2 %1185 }
 0x260   : > { %v1098_v49 = vpop.permute.xlu0 %1097  ;;  %v2773_v17 = vld [vmem:[#allocation2 + $0x200] sm:$0xf] }
 0x261   : > { %v1101_v55 = vsel %vm912_vm5, %v1098_v49, %v1100_v54  ;;  %v1102_v33 = vsel %vm912_vm5, %v1100_v54, %v1098_v49  ;;  %v2613_v54 = vld [vmem:[#allocation2 + $0xc0] sm:$0xf] }
 0x262   : > { %v1103_v34 = vmul.f32 %v1101_v55, %v918_v10  ;;  %v1104_v51 = vmul.f32 %v1102_v33, %v919_v11  ;;  %v3068_v49 = vld [vmem:[#allocation2 + $0xdc] sm:$0xf0] }
 0x263   : > { %v2869_v33 = vld [vmem:[#allocation2 + $0x2c0] sm:$0xf] }
 0x264   : > { %v1133_v58 = vpack.c.bf16 %v1103_v34, %v3632_v45  ;;  %v1134_v59 = vpack.c.bf16 %v1104_v51, %v3634_v46  ;;  %v3132_v34 = vld [vmem:[#allocation2 + $0x2dc] sm:$0xf0]  ;;  %v1188_v51 = vmul.f32 %v1186_v30, %v1034_v13 }
 0x265   : > { %v3108_v18 = vld [vmem:[#allocation2 + $0x21c] sm:$0xf0] }
 0x266   : > { %1153 = vmatpush.bf16.msrb.mxu0 %v1133_v58  ;;  %1166 = vmatpush.bf16.msrb.mxu1 %v1134_v59 }
 0x267   : > { %v1090_v36 = vpop.permute.xlu1 %1089 }
 0x268   : > { %v1093_v37 = vsel %vm896_vm6, %v1090_v36, %v1092_v35  ;;  %v1094_v38 = vsel %vm896_vm6, %v1092_v35, %v1090_v36  ;;  %v1084_v43 = vpop.permute.xlu0 %1083  ;;  %v1189_v35 = vmul.f32 %v1186_v30, %v1035_v14  ;;  %v3165_v30 = vld [vmem:[#allocation2 + $0x3e4] sm:$0xf0] }
 0x269   : > { %v1095_v10 = vmul.f32 %v1094_v38, %v902_v24  ;;  %v1096_v6 = vmul.f32 %v1093_v37, %v903_v25  ;;  %v1085_v11 = vsel %vm880_vm7, %v1082_v32, %v1084_v43  ;;  %v1086_v44 = vsel %vm880_vm7, %v1084_v43, %v1082_v32 }
 0x26a   : > { %v1087_v45 = vmul.f32 %v1086_v44, %v886_v26  ;;  %v1088_v46 = vmul.f32 %v1085_v11, %v887_v27  ;;  %v2902_v32 = vor.u32 %v3140_v29, %v2901_v28  ;;  %v2614_v38 = vor.u32 %v3068_v49, %v2613_v54  ;;  %v3005_v29 = vld [vmem:[#allocation2 + $0x3c8] sm:$0xf] }
 0x26b   : > { %v2870_v43 = vor.u32 %v3132_v34, %v2869_v33  ;;  %v2750_v54 = vor.u32 %v3101_v22, %v2749_v19  ;;  %v3080_v33 = vld [vmem:[#allocation2 + $0x144] sm:$0xf]  ;;  %v2717_v34 = vld [vmem:[#allocation2 + $0x188] sm:$0xf] }
 0x26c   : > { %v1131_v52 = vpack.c.bf16 %v1095_v10, %v1087_v45  ;;  %v1132_v60 = vpack.c.bf16 %v1096_v6, %v1088_v46  ;;  %v2581_v10 = vld [vmem:[#allocation2 + $0x80] sm:$0xf]  ;;  %v3061_v19 = vld [vmem:[#allocation2 + $0xa4] sm:$0xf0] }
 0x26d   : > { %v3060_v6 = vld [vmem:[#allocation2 + $0x9c] sm:$0xf0] }
 0x26e   : > { %1154 = vmatpush.bf16.msrb.mxu0 %v1131_v52  ;;  %1167 = vmatpush.bf16.msrb.mxu1 %v1132_v60  ;;  %v2837_v45 = vld [vmem:[#allocation2 + $0x280] sm:$0xf] }
 0x26f   : > { %v1068_v61 = vpop.permute.xlu1 %1067  ;;  %v3124_v46 = vld [vmem:[#allocation2 + $0x29c] sm:$0xf0] }
 0x270   : > { %v1066_v24 = vpop.permute.xlu0 %1065  ;;  %v2838_v14 = vor.u32 %v3124_v46, %v2837_v45  ;;  %v3085_v45 = vld [vmem:[#allocation2 + $0x164] sm:$0xf0]  ;;  %v2647_v46 = vld [vmem:[#allocation2 + $0x120] sm:$0xf0] }
 0x271   : > { %v1069_v20 = vsel %vm849_vm8, %v1066_v24, %v1068_v61  ;;  %v1070_v25 = vsel %vm849_vm8, %v1068_v61, %v1066_v24  ;;  %v2582_v24 = vor.u32 %v3060_v6, %v2581_v10  ;;  %v3052_v61 = vld [vmem:[#allocation2 + $0x5c] sm:$0xf0] }
 0x272   : > { %v1071_v27 = vmul.f32 %v1070_v25, %v854_v50  ;;  %v1072_v0 = vmul.f32 %v1069_v20, %v855_v53  ;;  %v3100_v50 = vld [vmem:[#allocation2 + $0x1dc] sm:$0xf0] }
 0x273   : > { %v2997_v53 = vld [vmem:[#allocation2 + $0x3c0] sm:$0xf]  ;;  %v2742_v5 = vor.u32 %v3100_v50, %v2741_v47  ;;  %v2550_v47 = vor.u32 %v3052_v61, %v2549_v12  ;;  %v3149_v12 = vld [vmem:[#allocation2 + $0x364] sm:$0xf0] }
 0x274   : > { %v2805_v20 = vld [vmem:[#allocation2 + $0x240] sm:$0xf] }
 0x275   : > { %v3116_v25 = vld [vmem:[#allocation2 + $0x25c] sm:$0xf0] }
 0x277   : > { %v1178_v55 = vpop.permute.xlu1 %1177 }
 0x278   : > { %v1076_v63 = vpop.permute.xlu0 %1075 }
 0x279   : > { %v1077_v26 = vsel %vm864_vm9, %v1074_v62, %v1076_v63  ;;  %v1078_v21 = vsel %vm864_vm9, %v1076_v63, %v1074_v62 }
 0x27a   : > { %v1079_v1 = vmul.f32 %v1078_v21, %v870_v56  ;;  %v1080_v2 = vmul.f32 %v1077_v26, %v871_v57  ;;  %v3164_v56 = vld [vmem:[#allocation2 + $0x3dc] sm:$0xf0] }
 0x27b   : > { %v2998_v7 = vor.u32 %v3164_v56, %v2997_v53  ;;  %v3092_v57 = vld [vmem:[#allocation2 + $0x19c] sm:$0xf0] }
 0x27c   : > { %v1129_v3 = vpack.c.bf16 %v1079_v1, %v1071_v27  ;;  %v1130_v4 = vpack.c.bf16 %v1080_v2, %v1072_v0  ;;  %v2710_v15 = vor.u32 %v3092_v57, %v2709_v48  ;;  %v3096_v27 = vld [vmem:[#allocation2 + $0x1c4] sm:$0xf]  ;;  %v2517_v56 = vld [vmem:[#allocation2] sm:$0xf] }
 0x27d   : > { %v3088_v48 = vld [vmem:[#allocation2 + $0x184] sm:$0xf] }
 0x27e   : > { %1155 = vmatpush.bf16.msrb.mxu0 %v1129_v3  ;;  %1168 = vmatpush.bf16.msrb.mxu1 %v1130_v4  ;;  %v2743_v3 = vld [vmem:[#allocation2 + $0x1e0] sm:$0xf0] }
 0x27f   : > { %v1213_v0 = vpop.permute.xlu1 %1212  ;;  %v3160_v4 = vld [vmem:[#allocation2 + $0x3c4] sm:$0xf] }
 0x280   : > { %v1196_v52 = vpop.permute.xlu0 %1195  ;;  %v2711_v57 = vld [vmem:[#allocation2 + $0x1a0] sm:$0xf0] }
 0x281   : > { %2511 = vmatmul.msk.bf16.vlgmr.msrb.gmra.mxu0 %vm982_vm10, %v1056_v39  ;;  %2512 = vmatmul.msk.bf16.vlgmr.msrb.gmra.mxu1 %vm982_vm10, %v1056_v39  ;;  %v2999_v39 = vld [vmem:[#allocation2 + $0x3e0] sm:$0xf0]  ;;  %v2714_v49 = vor.u32 %v3088_v48, %v2711_v57  ;;  %v2877_v57 = vld [vmem:[#allocation2 + $0x2c8] sm:$0xf] }
 0x282   : > { %2032 = vmatpush.bf16.msra.mxu0 %v2742_v5  ;;  %2045 = vmatpush.bf16.msra.mxu1 %v2998_v7  ;;  %v2806_v5 = vor.u32 %v3116_v25, %v2805_v20  ;;  %v3044_v7 = vld [vmem:[#allocation2 + $0x1c] sm:$0xf0]  ;;  %v3064_v25 = vld [vmem:[#allocation2 + $0xc4] sm:$0xf] }
 0x286   : > { %2033 = vmatpush.bf16.msra.mxu0 %v2710_v15  ;;  %2046 = vmatpush.bf16.msra.mxu1 %v2966_v16  ;;  %v2746_v15 = vor.u32 %v3096_v27, %v2743_v3  ;;  %v3002_v16 = vor.u32 %v3160_v4, %v2999_v39  ;;  %v2871_v27 = vld [vmem:[#allocation2 + $0x2e0] sm:$0xf0] }
 0x28a   : > { %2034 = vmatpush.bf16.msra.mxu0 %v2678_v40  ;;  %2047 = vmatpush.bf16.msra.mxu1 %v2934_v42  ;;  %v2967_v40 = vld [vmem:[#allocation2 + $0x3a0] sm:$0xf0]  ;;  %v2518_v42 = vor.u32 %v3044_v7, %v2517_v56 }
 0x28b   : > { %v3120_v56 = vld [vmem:[#allocation2 + $0x284] sm:$0xf] }
 0x28c   : > { %v2839_v7 = vld [vmem:[#allocation2 + $0x2a0] sm:$0xf0] }
 0x28e   : > { %2035 = vmatpush.bf16.msra.mxu0 %v2646_v31  ;;  %2048 = vmatpush.bf16.msra.mxu1 %v2902_v32  ;;  %v1208_v31 = vld [vmem:[%s3822_s15] sm:$0x3]  ;;  %v2774_v32 = vor.u32 %v3108_v18, %v2773_v17  ;;  %v3048_v17 = vld [vmem:[#allocation2 + $0x44] sm:$0xf]  ;;  %v2589_v18 = vld [vmem:[#allocation2 + $0x88] sm:$0xf] }
 0x292   : > { %2036 = vmatpush.bf16.msra.mxu0 %v2614_v38  ;;  %2049 = vmatpush.bf16.msra.mxu1 %v2870_v43  ;;  %v3157_v38 = vld [vmem:[#allocation2 + $0x3a4] sm:$0xf0] }
 0x296   : > { %2037 = vmatpush.bf16.msra.mxu0 %v2582_v24  ;;  %2050 = vmatpush.bf16.msra.mxu1 %v2838_v14  ;;  %v2941_v24 = vld [vmem:[#allocation2 + $0x348] sm:$0xf] }
 0x29a   : > { %2038 = vmatpush.bf16.msra.mxu0 %v2550_v47  ;;  %2051 = vmatpush.bf16.msra.mxu1 %v2806_v5  ;;  %v3056_v47 = vld [vmem:[#allocation2 + $0x84] sm:$0xf] }
 0x29b   : > { %v2583_v5 = vld [vmem:[#allocation2 + $0xa0] sm:$0xf0] }
 0x29e   : > { %2039 = vmatpush.bf16.msra.mxu0 %v2518_v42  ;;  %2052 = vmatpush.bf16.msra.mxu1 %v2774_v32  ;;  %v2807_v42 = vld [vmem:[#allocation2 + $0x260] sm:$0xf0] }
 0x29f   : > { %v3040_v32 = vld [vmem:[#allocation2 + $0x4] sm:$0xf] }
 0x2a2   : > { %2084 = vmatpush.bf16.msrb.mxu0 %v2750_v54  ;;  %v2519_v54 = vld [vmem:[#allocation2 + $0x20] sm:$0xf0] }
 0x2fe   : > { %v1157_v58 = vpop.f32.mrf.mxu0  ;;  %v1170_v59 = vpop.f32.mrf.mxu1 }
 0x2ff   : > { %v1180_v36 = vmul.f32 %v1178_v55, %v1157_v58  ;;  %v1181_v37 = vmul.f32 %v1178_v55, %v1170_v59  ;;  %v2970_v55 = vor.u32 %v3152_v41, %v2967_v40  ;;  %v2679_v58 = vld [vmem:[#allocation2 + $0x160] sm:$0xf0] }
 0x300   : > { %v3144_v59 = vld [vmem:[#allocation2 + $0x344] sm:$0xf]  ;;  %v2682_v10 = vor.u32 %v3080_v33, %v2679_v58  ;;  %v3097_v33 = vld [vmem:[#allocation2 + $0x1cc] sm:$0xf] }
 0x301   : > { %v1190_v11 = vadd.f32 %v1188_v51, %v1180_v36  ;;  %v1191_v44 = vadd.f32 %v1189_v35, %v1181_v37  ;;  %v3093_v51 = vld [vmem:[#allocation2 + $0x1a4] sm:$0xf0]  ;;  %v2935_v35 = vld [vmem:[#allocation2 + $0x360] sm:$0xf0]  ;;  %v3006_v36 = vor.u32 %v3165_v30, %v3005_v29  ;;  %v2590_v29 = vor.u32 %v3061_v19, %v2589_v18  ;;  %v3161_v58 = vld [vmem:[#allocation2 + $0x3cc] sm:$0xf] }
 0x302   : > { %v2973_v37 = vld [vmem:[#allocation2 + $0x388] sm:$0xf]  ;;  %v2718_v43 = vor.u32 %v3093_v51, %v2717_v34  ;;  %v2938_v6 = vor.u32 %v3144_v59, %v2935_v35  ;;  %v2551_v41 = vld [vmem:[#allocation2 + $0x60] sm:$0xf0]  ;;  %v2751_v51 = vld [vmem:[#allocation2 + $0x1e8] sm:$0xf0]  ;;  %v2522_v35 = vor.u32 %v3040_v32, %v2519_v54 }
 0x303   : > { %v1198_v13 = vadd.f32 %v1196_v52, %v1190_v11  ;;  %v1199_v60 = vadd.f32 %v1196_v52, %v1191_v44  ;;  %v3072_v11 = vld [vmem:[#allocation2 + $0x104] sm:$0xf]  ;;  %v2685_v44 = vld [vmem:[#allocation2 + $0x148] sm:$0xf]  ;;  %2097 = vmatpush.bf16.msrb.mxu1 %v3006_v36  ;;  %v2554_v30 = vor.u32 %v3048_v17, %v2551_v41  ;;  %v3007_v59 = vld [vmem:[#allocation2 + $0x3e8] sm:$0xf0] }
 0x304   : > { %v3136_v52 = vld [vmem:[#allocation2 + $0x304] sm:$0xf]  ;;  %2085 = vmatpush.bf16.msrb.mxu0 %v2718_v43  ;;  %v2686_v14 = vor.u32 %v3085_v45, %v2685_v44  ;;  %v2650_v61 = vor.u32 %v3072_v11, %v2647_v46  ;;  %v3089_v43 = vld [vmem:[#allocation2 + $0x18c] sm:$0xf]  ;;  %v2525_v41 = vld [vmem:[#allocation2 + $0x8] sm:$0xf] }
 0x305   : > { %vm1200_vm13 = vcmp.ge.f32.partialorder %v1198_v13, 0.0  ;;  %v1202_v62 = vmul.f32 0.2, %v1198_v13  ;;  %vm1201_vm14 = vcmp.ge.f32.partialorder %v1199_v60, 0.0  ;;  %v1203_v63 = vmul.f32 0.2, %v1199_v60 }
 0x306   : > { %v1159_v26 = vpop.f32.mrf.mxu0  ;;  %v1172_v21 = vpop.f32.mrf.mxu1  ;;  %v3112_v40 = vld [vmem:[#allocation2 + $0x244] sm:$0xf]  ;;  %v2975_v11 = vld [vmem:[#allocation2 + $0x3a8] sm:$0xf0] }
 0x307   : > { %v1204_v1 = vsel %vm1200_vm13, %v1198_v13, %v1202_v62  ;;  %v1205_v2 = vsel %vm1201_vm14, %v1199_v60, %v1203_v63  ;;  %v2903_v13 = vld [vmem:[#allocation2 + $0x320] sm:$0xf0]  ;;  %v2974_v60 = vor.u32 %v3157_v38, %v2973_v37  ;;  %v2653_v62 = vld [vmem:[#allocation2 + $0x108] sm:$0xf]  ;;  %v2754_v37 = vor.u32 %v3097_v33, %v2751_v51  ;;  %v3081_v46 = vld [vmem:[#allocation2 + $0x14c] sm:$0xf] }
 0x308   : > { %1206 = vst [vmem:[%s746_s26] sm:$0xff] %v1204_v1  ;;  %v1215_v50 = vmul.f32 %v1213_v0, %v1204_v1  ;;  %v1216_v53 = vmul.f32 %v1213_v0, %v1205_v2  ;;  %v2906_v20 = vor.u32 %v3136_v52, %v2903_v13  ;;  %v3077_v63 = vld [vmem:[#allocation2 + $0x124] sm:$0xf0]  ;;  %v2615_v26 = vld [vmem:[#allocation2 + $0xe0] sm:$0xf0]  ;;  %v2942_v0 = vor.u32 %v3149_v12, %v2941_v24  ;;  %v2687_v52 = vld [vmem:[#allocation2 + $0x168] sm:$0xf0] }
 0x309   : > { %1207 = vst [vmem:[%s746_s26 + $0x8] sm:$0xff] %v1205_v2  ;;  %v3128_v21 = vld [vmem:[#allocation2 + $0x2c4] sm:$0xf]  ;;  %2098 = vmatpush.bf16.msrb.mxu1 %v2974_v60  ;;  %v2909_v1 = vld [vmem:[#allocation2 + $0x308] sm:$0xf]  ;;  %2086 = vmatpush.bf16.msrb.mxu0 %v2686_v14  ;;  %v2654_v3 = vor.u32 %v3077_v63, %v2653_v62  ;;  %v2618_v4 = vor.u32 %v3064_v25, %v2615_v26 }
 0x30a   : > { %v1217_v8 = vpack.c.bf16 %v1215_v50, %v1215_v50  ;;  %v1218_v9 = vpack.c.bf16 %v1216_v53, %v1216_v53  ;;  %v3141_v2 = vld [vmem:[#allocation2 + $0x324] sm:$0xf0]  ;;  %v2874_v39 = vor.u32 %v3128_v21, %v2871_v27  ;;  %v3010_v38 = vor.u32 %v3161_v58, %v3007_v59  ;;  %v3145_v13 = vld [vmem:[#allocation2 + $0x34c] sm:$0xf]  ;;  %v3102_v51 = vld [vmem:[#allocation2 + $0x1ec] sm:$0xf0] }
 0x30b   : > { %v2621_v50 = vld [vmem:[#allocation2 + $0xc8] sm:$0xf]  ;;  %v2910_v48 = vor.u32 %v3141_v2, %v2909_v1  ;;  %v2943_v60 = vld [vmem:[#allocation2 + $0x368] sm:$0xf0]  ;;  %v2690_v24 = vor.u32 %v3081_v46, %v2687_v52 }
 0x30c   : > { %v1231_v23 = vsel %vm986_vm2, %v1217_v8, 0  ;;  %v1234_v28 = vsel %vm986_vm2, %v1218_v9, 0  ;;  %v3069_v53 = vld [vmem:[#allocation2 + $0xe4] sm:$0xf0]  ;;  %v2946_v12 = vor.u32 %v3145_v13, %v2943_v60  ;;  %v3073_v14 = vld [vmem:[#allocation2 + $0x10c] sm:$0xf] }
 0x30d   : > { %1243 = vmatpush.bf16.msrb.mxu2 %v1231_v23  ;;  %1256 = vmatpush.bf16.msrb.mxu3 %v1234_v28  ;;  %v3133_v8 = vld [vmem:[#allocation2 + $0x2e4] sm:$0xf0]  ;;  %v2622_v9 = vor.u32 %v3069_v53, %v2621_v50  ;;  %v2911_v25 = vld [vmem:[#allocation2 + $0x328] sm:$0xf0]  ;;  %v2725_v13 = vld [vmem:[#allocation2 + $0x190] sm:$0xf] }
 0x30e   : > { %2099 = vmatpush.bf16.msrb.mxu1 %v2942_v0  ;;  %2087 = vmatpush.bf16.msrb.mxu0 %v2654_v3  ;;  %v2878_v22 = vor.u32 %v3133_v8, %v2877_v57  ;;  %v2845_v23 = vld [vmem:[#allocation2 + $0x288] sm:$0xf]  ;;  %v3065_v26 = vld [vmem:[#allocation2 + $0xcc] sm:$0xf]  ;;  %v3094_v60 = vld [vmem:[#allocation2 + $0x1ac] sm:$0xf0] }
 0x30f   : > { %v3125_v28 = vld [vmem:[#allocation2 + $0x2a4] sm:$0xf0]  ;;  %v2623_v21 = vld [vmem:[#allocation2 + $0xe8] sm:$0xf0] }
 0x310   : > { %2513 = vmatmul.msk.bf16.vlgmr.msrb.gmra.mxu2 %vm1226_vm15, %v1208_v31  ;;  %2514 = vmatmul.msk.bf16.vlgmr.msrb.gmra.mxu3 %vm1226_vm15, %v1208_v31  ;;  %v2810_v31 = vor.u32 %v3112_v40, %v2807_v42  ;;  %v2846_v34 = vor.u32 %v3125_v28, %v2845_v23  ;;  %v3129_v27 = vld [vmem:[#allocation2 + $0x2cc] sm:$0xf]  ;;  %v2626_v1 = vor.u32 %v3065_v26, %v2623_v21  ;;  %v3117_v57 = vld [vmem:[#allocation2 + $0x264] sm:$0xf0] }
 0x311   : > { %2058 = vmatpush.bf16.msra.mxu2 %v2746_v15  ;;  %2071 = vmatpush.bf16.msra.mxu3 %v3002_v16  ;;  %v2586_v15 = vor.u32 %v3056_v47, %v2583_v5  ;;  %v2842_v16 = vor.u32 %v3120_v56, %v2839_v7  ;;  %v2879_v0 = vld [vmem:[#allocation2 + $0x2e8] sm:$0xf0]  ;;  %v2557_v5 = vld [vmem:[#allocation2 + $0x48] sm:$0xf]  ;;  %v2726_v26 = vor.u32 %v3094_v60, %v2725_v13  ;;  %v2565_v13 = vld [vmem:[#allocation2 + $0x50] sm:$0xf] }
 0x312   : > { %2100 = vmatpush.bf16.msrb.mxu1 %v2910_v48  ;;  %2088 = vmatpush.bf16.msrb.mxu0 %v2622_v9  ;;  %v2882_v2 = vor.u32 %v3129_v27, %v2879_v0  ;;  %v3057_v3 = vld [vmem:[#allocation2 + $0x8c] sm:$0xf]  ;;  %v3053_v56 = vld [vmem:[#allocation2 + $0x64] sm:$0xf0]  ;;  %v2693_v27 = vld [vmem:[#allocation2 + $0x150] sm:$0xf] }
 0x313   : > { %v2847_v47 = vld [vmem:[#allocation2 + $0x2a8] sm:$0xf0]  ;;  %v2813_v7 = vld [vmem:[#allocation2 + $0x248] sm:$0xf]  ;;  %v2558_v48 = vor.u32 %v3053_v56, %v2557_v5  ;;  %v3086_v0 = vld [vmem:[#allocation2 + $0x16c] sm:$0xf0] }
 0x314   : > { %v3049_v8 = vld [vmem:[#allocation2 + $0x4c] sm:$0xf]  ;;  %v3045_v40 = vld [vmem:[#allocation2 + $0x24] sm:$0xf0]  ;;  %v3146_v5 = vld [vmem:[#allocation2 + $0x354] sm:$0xf] }
 0x315   : > { %2059 = vmatpush.bf16.msra.mxu2 %v2714_v49  ;;  %2072 = vmatpush.bf16.msra.mxu3 %v2970_v55  ;;  %v3104_v49 = vld [vmem:[#allocation2 + $0x204] sm:$0xf]  ;;  %v2559_v9 = vld [vmem:[#allocation2 + $0x68] sm:$0xf0]  ;;  %v2781_v42 = vld [vmem:[#allocation2 + $0x208] sm:$0xf] }
 0x316   : > { %v2775_v55 = vld [vmem:[#allocation2 + $0x220] sm:$0xf0]  ;;  %2101 = vmatpush.bf16.msrb.mxu1 %v2878_v22  ;;  %2089 = vmatpush.bf16.msrb.mxu0 %v2590_v29  ;;  %v3113_v17 = vld [vmem:[#allocation2 + $0x24c] sm:$0xf]  ;;  %v2526_v22 = vor.u32 %v3045_v40, %v2525_v41  ;;  %v3109_v23 = vld [vmem:[#allocation2 + $0x224] sm:$0xf0] }
 0x317   : > { %v2778_v36 = vor.u32 %v3104_v49, %v2775_v55  ;;  %v2815_v18 = vld [vmem:[#allocation2 + $0x268] sm:$0xf0]  ;;  %v1222_v55 = vld.sshfl [vmem:[#allocation1] sm:$0xff pattern:$0x75316420] }
 0x318   : > { %v2818_v19 = vor.u32 %v3113_v17, %v2815_v18  ;;  %v3041_v28 = vld [vmem:[#allocation2 + $0xc] sm:$0xf]  ;;  %v1223_v33 = vld.sshfl [vmem:[#allocation1 + $0x8] sm:$0xff pattern:$0x75316420] }
 0x319   : > { %2060 = vmatpush.bf16.msra.mxu2 %v2682_v10  ;;  %2073 = vmatpush.bf16.msra.mxu3 %v2938_v6  ;;  %v2719_v10 = vld [vmem:[#allocation2 + $0x1a8] sm:$0xf0]  ;;  %v2951_v56 = vld [vmem:[#allocation2 + $0x370] sm:$0xf0]  ;;  %v3142_v17 = vld [vmem:[#allocation2 + $0x32c] sm:$0xf0] }
 0x31a   : > { %2102 = vmatpush.bf16.msrb.mxu1 %v2846_v34  ;;  %v3153_v6 = vld [vmem:[#allocation2 + $0x38c] sm:$0xf]  ;;  %v2722_v44 = vor.u32 %v3089_v43, %v2719_v10  ;;  %2090 = vmatpush.bf16.msrb.mxu0 %v2558_v48  ;;  %v2757_v34 = vld [vmem:[#allocation2 + $0x1d0] sm:$0xf]  ;;  %v2759_v10 = vld [vmem:[#allocation2 + $0x1f0] sm:$0xf0] }
 0x31b   : > { %v2978_v45 = vor.u32 %v3153_v6, %v2975_v11  ;;  %v2527_v29 = vld [vmem:[#allocation2 + $0x28] sm:$0xf0]  ;;  %v3162_v6 = vld [vmem:[#allocation2 + $0x3d4] sm:$0xf]  ;;  %v2758_v46 = vor.u32 %v3102_v51, %v2757_v34  ;;  %v3054_v60 = vld [vmem:[#allocation2 + $0x6c] sm:$0xf0] }
 0x31c   : > { %v3105_v32 = vld [vmem:[#allocation2 + $0x20c] sm:$0xf]  ;;  %v3015_v11 = vld [vmem:[#allocation2 + $0x3f0] sm:$0xf0] }
 0x31d   : > { %2061 = vmatpush.bf16.msra.mxu2 %v2650_v61  ;;  %2074 = vmatpush.bf16.msra.mxu3 %v2906_v20  ;;  %v2655_v61 = vld [vmem:[#allocation2 + $0x128] sm:$0xf0]  ;;  %v3074_v18 = vld [vmem:[#allocation2 + $0x114] sm:$0xf] }
 0x31e   : > { %v3137_v20 = vld [vmem:[#allocation2 + $0x30c] sm:$0xf]  ;;  %v2658_v62 = vor.u32 %v3073_v14, %v2655_v61  ;;  %2091 = vmatpush.bf16.msrb.mxu0 %v2526_v22  ;;  %v2981_v14 = vld [vmem:[#allocation2 + $0x390] sm:$0xf]  ;;  %v3138_v41 = vld [vmem:[#allocation2 + $0x314] sm:$0xf] }
 0x31f   : > { %v2914_v63 = vor.u32 %v3137_v20, %v2911_v25  ;;  %v2783_v54 = vld [vmem:[#allocation2 + $0x228] sm:$0xf0]  ;;  %v3158_v61 = vld [vmem:[#allocation2 + $0x3ac] sm:$0xf0]  ;;  %v3090_v20 = vld [vmem:[#allocation2 + $0x194] sm:$0xf] }
 0x320   : > { %v2786_v49 = vor.u32 %v3105_v32, %v2783_v54  ;;  %v2727_v25 = vld [vmem:[#allocation2 + $0x1b0] sm:$0xf0]  ;;  %v2982_v21 = vor.u32 %v3158_v61, %v2981_v14  ;;  %v3134_v32 = vld [vmem:[#allocation2 + $0x2ec] sm:$0xf0] }
 0x321   : > { %2062 = vmatpush.bf16.msra.mxu2 %v2618_v4  ;;  %2075 = vmatpush.bf16.msra.mxu3 %v2874_v39  ;;  %v2591_v4 = vld [vmem:[#allocation2 + $0xa8] sm:$0xf0]  ;;  %v2919_v40 = vld [vmem:[#allocation2 + $0x330] sm:$0xf0]  ;;  %v2821_v14 = vld [vmem:[#allocation2 + $0x250] sm:$0xf] }
 0x322   : > { %v3121_v39 = vld [vmem:[#allocation2 + $0x28c] sm:$0xf]  ;;  %v2594_v50 = vor.u32 %v3057_v3, %v2591_v4  ;;  %v2730_v3 = vor.u32 %v3090_v20, %v2727_v25  ;;  %v3066_v54 = vld [vmem:[#allocation2 + $0xd4] sm:$0xf]  ;;  %v3118_v61 = vld [vmem:[#allocation2 + $0x26c] sm:$0xf0] }
 0x323   : > { %v2850_v53 = vor.u32 %v3121_v39, %v2847_v47  ;;  %v2949_v39 = vld [vmem:[#allocation2 + $0x350] sm:$0xf]  ;;  %v3050_v20 = vld [vmem:[#allocation2 + $0x54] sm:$0xf] }
 0x324   : > { %v3150_v47 = vld [vmem:[#allocation2 + $0x36c] sm:$0xf0]  ;;  %v2567_v25 = vld [vmem:[#allocation2 + $0x70] sm:$0xf0] }
 0x325   : > { %2063 = vmatpush.bf16.msra.mxu2 %v2586_v15  ;;  %2076 = vmatpush.bf16.msra.mxu3 %v2842_v16  ;;  %v2814_v15 = vor.u32 %v3117_v57, %v2813_v7  ;;  %v2562_v16 = vor.u32 %v3049_v8, %v2559_v9  ;;  %v2694_v7 = vor.u32 %v3086_v0, %v2693_v27  ;;  %v2661_v57 = vld [vmem:[#allocation2 + $0x110] sm:$0xf] }
 0x326   : > { %v2950_v48 = vor.u32 %v3150_v47, %v2949_v39  ;;  %v3078_v8 = vld [vmem:[#allocation2 + $0x12c] sm:$0xf0]  ;;  %v2822_v27 = vor.u32 %v3118_v61, %v2821_v14  ;;  %v3042_v39 = vld [vmem:[#allocation2 + $0x14] sm:$0xf]  ;;  %v3075_v14 = vld [vmem:[#allocation2 + $0x11c] sm:$0xf] }
 0x327   : > { %2103 = vmatpush.bf16.msrb.mxu1 %v2814_v15  ;;  %v2954_v15 = vor.u32 %v3146_v5, %v2951_v56  ;;  %v3046_v0 = vld [vmem:[#allocation2 + $0x2c] sm:$0xf0]  ;;  %v2535_v47 = vld [vmem:[#allocation2 + $0x30] sm:$0xf0]  ;;  %v2765_v5 = vld [vmem:[#allocation2 + $0x1d8] sm:$0xf] }
 0x328   : > { %v3103_v56 = vld [vmem:[#allocation2 + $0x1f4] sm:$0xf0]  ;;  %v2671_v61 = vld [vmem:[#allocation2 + $0x138] sm:$0xf0] }
 0x329   : > { %2064 = vmatpush.bf16.msra.mxu2 %v2554_v30  ;;  %2077 = vmatpush.bf16.msra.mxu3 %v2810_v31  ;;  %v2782_v30 = vor.u32 %v3109_v23, %v2781_v42  ;;  %v2530_v31 = vor.u32 %v3041_v28, %v2527_v29  ;;  %v2662_v42 = vor.u32 %v3078_v8, %v2661_v57  ;;  %v2629_v23 = vld [vmem:[#allocation2 + $0xd0] sm:$0xf]  ;;  %v3099_v57 = vld [vmem:[#allocation2 + $0x1dc] sm:$0xf] }
 0x32a   : > { %v3070_v28 = vld [vmem:[#allocation2 + $0xec] sm:$0xf0] }
 0x32b   : > { %2104 = vmatpush.bf16.msrb.mxu1 %v2782_v30  ;;  %v2922_v30 = vor.u32 %v3138_v41, %v2919_v40  ;;  %v2630_v34 = vor.u32 %v3070_v28, %v2629_v23  ;;  %v2766_v41 = vor.u32 %v3103_v56, %v2765_v5  ;;  %v2605_v5 = vld [vmem:[#allocation2 + $0x98] sm:$0xf] }
 0x32c   : > { %v3063_v56 = vld [vmem:[#allocation2 + $0xb4] sm:$0xf0] }
 0x32d   : > { %2065 = vmatpush.bf16.msra.mxu2 %v2522_v35  ;;  %2078 = vmatpush.bf16.msra.mxu3 %v2778_v36  ;;  %v3013_v35 = vld [vmem:[#allocation2 + $0x3d0] sm:$0xf] }
 0x32e   : > { %v3166_v36 = vld [vmem:[#allocation2 + $0x3ec] sm:$0xf0] }
 0x32f   : > { %v3014_v52 = vor.u32 %v3166_v36, %v3013_v35 }
 0x331   : > { %2110 = vmatpush.bf16.msrb.mxu2 %v2754_v37  ;;  %2123 = vmatpush.bf16.msrb.mxu3 %v3010_v38  ;;  %v3098_v37 = vld [vmem:[#allocation2 + $0x1d4] sm:$0xf] }
 0x335   : > { %2111 = vmatpush.bf16.msrb.mxu2 %v2722_v44  ;;  %2124 = vmatpush.bf16.msrb.mxu3 %v2978_v45 }
 0x339   : > { %2112 = vmatpush.bf16.msrb.mxu2 %v2690_v24  ;;  %2125 = vmatpush.bf16.msrb.mxu3 %v2946_v12  ;;  %v2762_v24 = vor.u32 %v3098_v37, %v2759_v10  ;;  %v3018_v12 = vor.u32 %v3162_v6, %v3015_v11  ;;  %v2853_v37 = vld [vmem:[#allocation2 + $0x290] sm:$0xf]  ;;  %v2599_v10 = vld [vmem:[#allocation2 + $0xb0] sm:$0xf0] }
 0x33a   : > { %v3122_v6 = vld [vmem:[#allocation2 + $0x294] sm:$0xf] }
 0x33b   : > { %v2855_v11 = vld [vmem:[#allocation2 + $0x2b0] sm:$0xf0] }
 0x33d   : > { %2113 = vmatpush.bf16.msrb.mxu2 %v2658_v62  ;;  %2126 = vmatpush.bf16.msrb.mxu3 %v2914_v63  ;;  %v3154_v62 = vld [vmem:[#allocation2 + $0x394] sm:$0xf] }
 0x33e   : > { %v2983_v63 = vld [vmem:[#allocation2 + $0x3b0] sm:$0xf0] }
 0x33f   : > { %v2986_v4 = vor.u32 %v3154_v62, %v2983_v63  ;;  %v3114_v62 = vld [vmem:[#allocation2 + $0x254] sm:$0xf] }
 0x340   : > { %v2823_v63 = vld [vmem:[#allocation2 + $0x270] sm:$0xf0] }
 0x341   : > { %2114 = vmatpush.bf16.msrb.mxu2 %v2626_v1  ;;  %2127 = vmatpush.bf16.msrb.mxu3 %v2882_v2 }
 0x345   : > { %2115 = vmatpush.bf16.msrb.mxu2 %v2594_v50  ;;  %2128 = vmatpush.bf16.msrb.mxu3 %v2850_v53  ;;  %v3082_v50 = vld [vmem:[#allocation2 + $0x154] sm:$0xf] }
 0x346   : > { %v2695_v53 = vld [vmem:[#allocation2 + $0x170] sm:$0xf0] }
 0x347   : > { %v2698_v9 = vor.u32 %v3082_v50, %v2695_v53  ;;  %v3106_v50 = vld [vmem:[#allocation2 + $0x214] sm:$0xf] }
 0x348   : > { %v2791_v53 = vld [vmem:[#allocation2 + $0x230] sm:$0xf0] }
 0x349   : > { %2116 = vmatpush.bf16.msrb.mxu2 %v2562_v16  ;;  %2129 = vmatpush.bf16.msrb.mxu3 %v2818_v19  ;;  %v2917_v16 = vld [vmem:[#allocation2 + $0x310] sm:$0xf]  ;;  %v2663_v19 = vld [vmem:[#allocation2 + $0x130] sm:$0xf0] }
 0x34a   : > { %v2918_v22 = vor.u32 %v3142_v17, %v2917_v16  ;;  %v2666_v29 = vor.u32 %v3074_v18, %v2663_v19  ;;  %v3163_v16 = vld [vmem:[#allocation2 + $0x3dc] sm:$0xf]  ;;  %v2538_v18 = vor.u32 %v3042_v39, %v2535_v47  ;;  %v2794_v19 = vor.u32 %v3106_v50, %v2791_v53 }
 0x34b   : > { %v3023_v17 = vld [vmem:[#allocation2 + $0x3f8] sm:$0xf0] }
 0x34c   : > { %v3026_v28 = vor.u32 %v3163_v16, %v3023_v17  ;;  %v3131_v39 = vld [vmem:[#allocation2 + $0x2dc] sm:$0xf] }
 0x34d   : > { %2117 = vmatpush.bf16.msrb.mxu2 %v2530_v31  ;;  %2130 = vmatpush.bf16.msrb.mxu3 %v2786_v49  ;;  %v2885_v31 = vld [vmem:[#allocation2 + $0x2d0] sm:$0xf]  ;;  %v2631_v49 = vld [vmem:[#allocation2 + $0xf0] sm:$0xf0]  ;;  %v2895_v47 = vld [vmem:[#allocation2 + $0x2f8] sm:$0xf0] }
 0x34e   : > { %v2886_v51 = vor.u32 %v3134_v32, %v2885_v31  ;;  %v2634_v35 = vor.u32 %v3066_v54, %v2631_v49  ;;  %v3091_v31 = vld [vmem:[#allocation2 + $0x19c] sm:$0xf] }
 0x34f   : > { %v2735_v32 = vld [vmem:[#allocation2 + $0x1b8] sm:$0xf0] }
 0x350   : > { %v3155_v54 = vld [vmem:[#allocation2 + $0x39c] sm:$0xf] }
 0x351   : > { %v2991_v49 = vld [vmem:[#allocation2 + $0x3b8] sm:$0xf0] }
 0x352   : > { %v3123_v16 = vld [vmem:[#allocation2 + $0x29c] sm:$0xf] }
 0x353   : > { %v2863_v17 = vld [vmem:[#allocation2 + $0x2b8] sm:$0xf0] }
 0x393   : > { %v1245_v58 = vpop.f32.mrf.mxu2  ;;  %v1258_v59 = vpop.f32.mrf.mxu3 }
 0x394   : > { %v1246_v38 = vadd.f32 %v1245_v58, %v1222_v55  ;;  %v1259_v43 = vadd.f32 %v1258_v59, %v1223_v33  ;;  %v3130_v55 = vld [vmem:[#allocation2 + $0x2d4] sm:$0xf]  ;;  %v2597_v58 = vld [vmem:[#allocation2 + $0x90] sm:$0xf] }
 0x395   : > { %v2887_v33 = vld [vmem:[#allocation2 + $0x2f0] sm:$0xf0]  ;;  %v3062_v59 = vld [vmem:[#allocation2 + $0xac] sm:$0xf0] }
 0x396   : > { %v3770_v44 = vpack.c.bf16 %v1246_v38, %v1246_v38  ;;  %v3772_v45 = vpack.c.bf16 %v1259_v43, %v1259_v43  ;;  %v2890_v36 = vor.u32 %v3130_v55, %v2887_v33  ;;  %v3126_v38 = vld [vmem:[#allocation2 + $0x2ac] sm:$0xf0]  ;;  %v3058_v43 = vld [vmem:[#allocation2 + $0x94] sm:$0xf] }
 0x398   : > { %2040 = vmatmul.bf16.vlgmr.msra.gmra.mxu0 %v3770_v44  ;;  %2053 = vmatmul.bf16.vlgmr.msra.gmra.mxu1 %v3772_v45 }
 0x399   : > { %2066 = vmatmul.bf16.vlgmr.msra.gmra.mxu2 %v3770_v44  ;;  %2079 = vmatmul.bf16.vlgmr.msra.gmra.mxu3 %v3772_v45 }
 0x39a   : > { %2136 = vmatpush.bf16.msra.mxu0 %v2758_v46  ;;  %2149 = vmatpush.bf16.msra.mxu1 %v3014_v52  ;;  %v2598_v46 = vor.u32 %v3062_v59, %v2597_v58  ;;  %v2854_v52 = vor.u32 %v3126_v38, %v2853_v37  ;;  %v2738_v58 = vor.u32 %v3091_v31, %v2735_v32  ;;  %v3083_v37 = vld [vmem:[#allocation2 + $0x15c] sm:$0xf] }
 0x39b   : > { %2162 = vmatpush.bf16.msra.mxu2 %v2762_v24  ;;  %2175 = vmatpush.bf16.msra.mxu3 %v3018_v12  ;;  %v1247_v1 = vpop.f32.mrf.mxu2  ;;  %v1260_v2 = vpop.f32.mrf.mxu3  ;;  %v2602_v24 = vor.u32 %v3058_v43, %v2599_v10  ;;  %v2858_v12 = vor.u32 %v3122_v6, %v2855_v11  ;;  %v2994_v59 = vor.u32 %v3155_v54, %v2991_v49  ;;  %v2703_v38 = vld [vmem:[#allocation2 + $0x178] sm:$0xf0] }
 0x39c   : > { %v2789_v1 = vld [vmem:[#allocation2 + $0x210] sm:$0xf]  ;;  %v3147_v43 = vld [vmem:[#allocation2 + $0x35c] sm:$0xf] }
 0x39d   : > { %v3110_v2 = vld [vmem:[#allocation2 + $0x22c] sm:$0xf0]  ;;  %v2959_v10 = vld [vmem:[#allocation2 + $0x378] sm:$0xf0] }
 0x39e   : > { %2137 = vmatpush.bf16.msra.mxu0 %v2726_v26  ;;  %2150 = vmatpush.bf16.msra.mxu1 %v2982_v21  ;;  %v2533_v26 = vld [vmem:[#allocation2 + $0x10] sm:$0xf]  ;;  %v2566_v21 = vor.u32 %v3054_v60, %v2565_v13  ;;  %v2706_v13 = vor.u32 %v3083_v37, %v2703_v38  ;;  %v2962_v60 = vor.u32 %v3147_v43, %v2959_v10  ;;  %v3115_v31 = vld [vmem:[#allocation2 + $0x25c] sm:$0xf] }
 0x39f   : > { %2163 = vmatpush.bf16.msra.mxu2 %v2730_v3  ;;  %2176 = vmatpush.bf16.msra.mxu3 %v2986_v4  ;;  %v2570_v3 = vor.u32 %v3050_v20, %v2567_v25  ;;  %v2826_v4 = vor.u32 %v3114_v62, %v2823_v63  ;;  %v2534_v8 = vor.u32 %v3046_v0, %v2533_v26  ;;  %v3139_v20 = vld [vmem:[#allocation2 + $0x31c] sm:$0xf]  ;;  %v2637_v26 = vld [vmem:[#allocation2 + $0xd8] sm:$0xf] }
 0x3a0   : > { %v2927_v25 = vld [vmem:[#allocation2 + $0x338] sm:$0xf0] }
 0x3a1   : > { %v2930_v0 = vor.u32 %v3139_v20, %v2927_v25  ;;  %v2831_v32 = vld [vmem:[#allocation2 + $0x278] sm:$0xf0] }
 0x3a2   : > { %2138 = vmatpush.bf16.msra.mxu0 %v2694_v7  ;;  %2151 = vmatpush.bf16.msra.mxu1 %v2950_v48  ;;  %v3021_v7 = vld [vmem:[#allocation2 + $0x3d8] sm:$0xf]  ;;  %v3107_v37 = vld [vmem:[#allocation2 + $0x21c] sm:$0xf] }
 0x3a3   : > { %2164 = vmatpush.bf16.msra.mxu2 %v2698_v9  ;;  %2177 = vmatpush.bf16.msra.mxu3 %v2954_v15  ;;  %v3167_v48 = vld [vmem:[#allocation2 + $0x3f4] sm:$0xf0]  ;;  %v2790_v9 = vor.u32 %v3110_v2, %v2789_v1  ;;  %v2767_v15 = vld [vmem:[#allocation2 + $0x1f8] sm:$0xf0] }
 0x3a4   : > { %v3022_v40 = vor.u32 %v3167_v48, %v3021_v7  ;;  %v2770_v23 = vor.u32 %v3099_v57, %v2767_v15  ;;  %v2893_v1 = vld [vmem:[#allocation2 + $0x2d8] sm:$0xf]  ;;  %v2898_v48 = vor.u32 %v3131_v39, %v2895_v47  ;;  %v2607_v15 = vld [vmem:[#allocation2 + $0xb8] sm:$0xf0] }
 0x3a5   : > { %v3135_v2 = vld [vmem:[#allocation2 + $0x2f4] sm:$0xf0]  ;;  %v2799_v38 = vld [vmem:[#allocation2 + $0x238] sm:$0xf0] }
 0x3a6   : > { %2139 = vmatpush.bf16.msra.mxu0 %v2662_v42  ;;  %2152 = vmatpush.bf16.msra.mxu1 %v2918_v22  ;;  %v2733_v42 = vld [vmem:[#allocation2 + $0x198] sm:$0xf]  ;;  %v2894_v53 = vor.u32 %v3135_v2, %v2893_v1 }
 0x3a7   : > { %2165 = vmatpush.bf16.msra.mxu2 %v2666_v29  ;;  %2178 = vmatpush.bf16.msra.mxu3 %v2922_v30  ;;  %v3095_v22 = vld [vmem:[#allocation2 + $0x1b4] sm:$0xf0] }
 0x3a8   : > { %2092 = vmatmul.bf16.vlgmr.msrb.gmra.mxu0 %v3770_v44  ;;  %2105 = vmatmul.bf16.vlgmr.msrb.gmra.mxu1 %v3772_v45  ;;  %v2989_v29 = vld [vmem:[#allocation2 + $0x398] sm:$0xf]  ;;  %v2734_v55 = vor.u32 %v3095_v22, %v2733_v42  ;;  %v2866_v22 = vor.u32 %v3123_v16, %v2863_v17 }
 0x3a9   : > { %2118 = vmatmul.bf16.vlgmr.msrb.gmra.mxu2 %v3770_v44  ;;  %2131 = vmatmul.bf16.vlgmr.msrb.gmra.mxu3 %v3772_v45  ;;  %v3159_v30 = vld [vmem:[#allocation2 + $0x3b4] sm:$0xf0] }
 0x3aa   : > { %2140 = vmatpush.bf16.msra.mxu0 %v2630_v34  ;;  %2153 = vmatpush.bf16.msra.mxu1 %v2886_v51  ;;  %v2990_v33 = vor.u32 %v3159_v30, %v2989_v29  ;;  %v2701_v34 = vld [vmem:[#allocation2 + $0x158] sm:$0xf]  ;;  %v3051_v29 = vld [vmem:[#allocation2 + $0x5c] sm:$0xf] }
 0x3ab   : > { %2166 = vmatpush.bf16.msra.mxu2 %v2634_v35  ;;  %2179 = vmatpush.bf16.msra.mxu3 %v2890_v36  ;;  %v3087_v51 = vld [vmem:[#allocation2 + $0x174] sm:$0xf0]  ;;  %v2575_v30 = vld [vmem:[#allocation2 + $0x78] sm:$0xf0] }
 0x3ac   : > { %v2957_v35 = vld [vmem:[#allocation2 + $0x358] sm:$0xf]  ;;  %v2702_v6 = vor.u32 %v3087_v51, %v2701_v34  ;;  %v2578_v34 = vor.u32 %v3051_v29, %v2575_v30  ;;  %v2834_v51 = vor.u32 %v3115_v31, %v2831_v32 }
 0x3ad   : > { %v3151_v36 = vld [vmem:[#allocation2 + $0x374] sm:$0xf0] }
 0x3ae   : > { %2141 = vmatpush.bf16.msra.mxu0 %v2598_v46  ;;  %2154 = vmatpush.bf16.msra.mxu1 %v2854_v52  ;;  %v2958_v11 = vor.u32 %v3151_v36, %v2957_v35  ;;  %v2669_v46 = vld [vmem:[#allocation2 + $0x118] sm:$0xf]  ;;  %v3043_v35 = vld [vmem:[#allocation2 + $0x1c] sm:$0xf] }
 0x3af   : > { %2167 = vmatpush.bf16.msra.mxu2 %v2602_v24  ;;  %2180 = vmatpush.bf16.msra.mxu3 %v2858_v12  ;;  %v3079_v52 = vld [vmem:[#allocation2 + $0x134] sm:$0xf0]  ;;  %v2543_v36 = vld [vmem:[#allocation2 + $0x38] sm:$0xf0] }
 0x3b0   : > { %v2925_v24 = vld [vmem:[#allocation2 + $0x318] sm:$0xf]  ;;  %v2670_v62 = vor.u32 %v3079_v52, %v2669_v46 }
 0x3b1   : > { %v3143_v12 = vld [vmem:[#allocation2 + $0x334] sm:$0xf0] }
 0x3b2   : > { %2142 = vmatpush.bf16.msra.mxu0 %v2566_v21  ;;  %2155 = vmatpush.bf16.msra.mxu1 %v2822_v27  ;;  %v2926_v63 = vor.u32 %v3143_v12, %v2925_v24  ;;  %v3071_v21 = vld [vmem:[#allocation2 + $0xf4] sm:$0xf0]  ;;  %v2674_v27 = vor.u32 %v3075_v14, %v2671_v61 }
 0x3b3   : > { %2168 = vmatpush.bf16.msra.mxu2 %v2570_v3  ;;  %2181 = vmatpush.bf16.msra.mxu3 %v2826_v4  ;;  %v3067_v3 = vld [vmem:[#allocation2 + $0xdc] sm:$0xf]  ;;  %v2638_v50 = vor.u32 %v3071_v21, %v2637_v26  ;;  %v2861_v57 = vld [vmem:[#allocation2 + $0x298] sm:$0xf] }
 0x3b4   : > { %v2639_v4 = vld [vmem:[#allocation2 + $0xf8] sm:$0xf0] }
 0x3b5   : > { %v2642_v7 = vor.u32 %v3067_v3, %v2639_v4 }
 0x3b6   : > { %2143 = vmatpush.bf16.msra.mxu0 %v2534_v8  ;;  %2156 = vmatpush.bf16.msra.mxu1 %v2790_v9  ;;  %v3127_v8 = vld [vmem:[#allocation2 + $0x2b4] sm:$0xf0]  ;;  %v3059_v9 = vld [vmem:[#allocation2 + $0x9c] sm:$0xf] }
 0x3b7   : > { %2169 = vmatpush.bf16.msra.mxu2 %v2538_v18  ;;  %2182 = vmatpush.bf16.msra.mxu3 %v2794_v19  ;;  %v2606_v18 = vor.u32 %v3063_v56, %v2605_v5  ;;  %v2862_v19 = vor.u32 %v3127_v8, %v2861_v57  ;;  %v2610_v42 = vor.u32 %v3059_v9, %v2607_v15 }
 0x3b9   : > { %2144 = vmatmul.bf16.vlgmr.msra.gmra.mxu0 %v3770_v44  ;;  %2157 = vmatmul.bf16.vlgmr.msra.gmra.mxu1 %v3772_v45 }
 0x3ba   : > { %2188 = vmatpush.bf16.msrb.mxu0 %v2766_v41  ;;  %2201 = vmatpush.bf16.msrb.mxu1 %v3022_v40  ;;  %v2573_v41 = vld [vmem:[#allocation2 + $0x58] sm:$0xf] }
 0x3bb   : > { %2214 = vmatpush.bf16.msrb.mxu2 %v2770_v23  ;;  %2227 = vmatpush.bf16.msrb.mxu3 %v3026_v28  ;;  %v3055_v40 = vld [vmem:[#allocation2 + $0x74] sm:$0xf0] }
 0x3bc   : > { %2170 = vmatmul.bf16.vlgmr.msra.gmra.mxu2 %v3770_v44  ;;  %2183 = vmatmul.bf16.vlgmr.msra.gmra.mxu3 %v3772_v45  ;;  %v2829_v23 = vld [vmem:[#allocation2 + $0x258] sm:$0xf]  ;;  %v2574_v54 = vor.u32 %v3055_v40, %v2573_v41 }
 0x3bd   : > { %v3119_v28 = vld [vmem:[#allocation2 + $0x274] sm:$0xf0] }
 0x3be   : > { %2189 = vmatpush.bf16.msrb.mxu0 %v2734_v55  ;;  %2202 = vmatpush.bf16.msrb.mxu1 %v2990_v33  ;;  %v2830_v49 = vor.u32 %v3119_v28, %v2829_v23  ;;  %v2541_v55 = vld [vmem:[#allocation2 + $0x18] sm:$0xf] }
 0x3bf   : > { %2215 = vmatpush.bf16.msrb.mxu2 %v2738_v58  ;;  %2228 = vmatpush.bf16.msrb.mxu3 %v2994_v59  ;;  %v3047_v33 = vld [vmem:[#allocation2 + $0x34] sm:$0xf0] }
 0x3c0   : > { %v2797_v58 = vld [vmem:[#allocation2 + $0x218] sm:$0xf]  ;;  %v2542_v43 = vor.u32 %v3047_v33, %v2541_v55 }
 0x3c1   : > { %v3111_v59 = vld [vmem:[#allocation2 + $0x234] sm:$0xf0] }
 0x3c2   : > { %2190 = vmatpush.bf16.msrb.mxu0 %v2702_v6  ;;  %2203 = vmatpush.bf16.msrb.mxu1 %v2958_v11  ;;  %v2798_v10 = vor.u32 %v3111_v59, %v2797_v58  ;;  %v2546_v6 = vor.u32 %v3043_v35, %v2543_v36  ;;  %v2802_v11 = vor.u32 %v3107_v37, %v2799_v38 }
 0x3c3   : > { %2216 = vmatpush.bf16.msrb.mxu2 %v2706_v13  ;;  %2229 = vmatpush.bf16.msrb.mxu3 %v2962_v60 }
 0x3c6   : > { %2191 = vmatpush.bf16.msrb.mxu0 %v2670_v62  ;;  %2204 = vmatpush.bf16.msrb.mxu1 %v2926_v63 }
 0x3c7   : > { %2217 = vmatpush.bf16.msrb.mxu2 %v2674_v27  ;;  %2230 = vmatpush.bf16.msrb.mxu3 %v2930_v0 }
 0x3ca   : > { %2192 = vmatpush.bf16.msrb.mxu0 %v2638_v50  ;;  %2205 = vmatpush.bf16.msrb.mxu1 %v2894_v53 }
 0x3cb   : > { %2218 = vmatpush.bf16.msrb.mxu2 %v2642_v7  ;;  %2231 = vmatpush.bf16.msrb.mxu3 %v2898_v48 }
 0x3ce   : > { %2193 = vmatpush.bf16.msrb.mxu0 %v2606_v18  ;;  %2206 = vmatpush.bf16.msrb.mxu1 %v2862_v19 }
 0x3cf   : > { %2219 = vmatpush.bf16.msrb.mxu2 %v2610_v42  ;;  %2232 = vmatpush.bf16.msrb.mxu3 %v2866_v22 }
 0x3d2   : > { %2194 = vmatpush.bf16.msrb.mxu0 %v2574_v54  ;;  %2207 = vmatpush.bf16.msrb.mxu1 %v2830_v49 }
 0x3d3   : > { %2220 = vmatpush.bf16.msrb.mxu2 %v2578_v34  ;;  %2233 = vmatpush.bf16.msrb.mxu3 %v2834_v51 }
 0x3d6   : > { %2195 = vmatpush.bf16.msrb.mxu0 %v2542_v43  ;;  %2208 = vmatpush.bf16.msrb.mxu1 %v2798_v10 }
 0x3d7   : > { %2221 = vmatpush.bf16.msrb.mxu2 %v2546_v6  ;;  %2234 = vmatpush.bf16.msrb.mxu3 %v2802_v11 }
 0x3d9   : > { %2196 = vmatmul.bf16.vlgmr.msrb.gmra.mxu0 %v3770_v44  ;;  %2209 = vmatmul.bf16.vlgmr.msrb.gmra.mxu1 %v3772_v45 }
 0x3da   : > { %2222 = vmatmul.bf16.vlgmr.msrb.gmra.mxu2 %v3770_v44  ;;  %2235 = vmatmul.bf16.vlgmr.msrb.gmra.mxu3 %v3772_v45 }
 0x415   : > { %v2041_v46 = vpop.f32.mrf.mxu0  ;;  %v2054_v52 = vpop.f32.mrf.mxu1 }
 0x416   : > { %v2055_v61 = vadd.f32 %v2054_v52, %v2041_v46 }
 0x41c   : > { %v2067_v13 = vpop.f32.mrf.mxu2  ;;  %v2080_v60 = vpop.f32.mrf.mxu3 }
 0x41d   : > { %v2081_v24 = vadd.f32 %v2080_v60, %v2067_v13  ;;  %v2043_v12 = vpop.f32.mrf.mxu0  ;;  %v2056_v14 = vpop.f32.mrf.mxu1 }
 0x41f   : > { %v2248_v20 = vrot.slane %v2081_v24, 4 }
 0x421   : > { %v2252_v44 = vsel %vm986_vm2, %v2055_v61, %v2248_v20 }
 0x422   : > { %2260 = vst [vmem:[%s3794_s23] sm:$0x77] %v2252_v44 }
 0x424   : > { %v2069_v45 = vpop.f32.mrf.mxu2  ;;  %v2082_v25 = vpop.f32.mrf.mxu3 }
 0x425   : > { %v2093_v62 = vpop.f32.mrf.mxu0  ;;  %v2106_v63 = vpop.f32.mrf.mxu1 }
 0x426   : > { %v2107_v2 = vadd.f32 %v2106_v63, %v2093_v62 }
 0x42c   : > { %v2119_v26 = vpop.f32.mrf.mxu2  ;;  %v2132_v21 = vpop.f32.mrf.mxu3 }
 0x42d   : > { %v2133_v27 = vadd.f32 %v2132_v21, %v2119_v26  ;;  %v2095_v0 = vpop.f32.mrf.mxu0  ;;  %v2108_v1 = vpop.f32.mrf.mxu1 }
 0x42f   : > { %v2249_v3 = vrot.slane %v2133_v27, 4 }
 0x431   : > { %v2253_v4 = vsel %vm986_vm2, %v2107_v2, %v2249_v3 }
 0x432   : > { %2261 = vst [vmem:[%s3794_s23 + $0x8] sm:$0x77] %v2253_v4 }
 0x434   : > { %v2121_v39 = vpop.f32.mrf.mxu2  ;;  %v2134_v47 = vpop.f32.mrf.mxu3 }
 0x436   : > { %v2145_v50 = vpop.f32.mrf.mxu0  ;;  %v2158_v53 = vpop.f32.mrf.mxu1 }
 0x437   : > { %v2159_v8 = vadd.f32 %v2158_v53, %v2145_v50 }
 0x43e   : > { %v2147_v48 = vpop.f32.mrf.mxu0  ;;  %v2160_v57 = vpop.f32.mrf.mxu1 }
 0x43f   : > { %v2171_v5 = vpop.f32.mrf.mxu2  ;;  %v2184_v56 = vpop.f32.mrf.mxu3 }
 0x440   : > { %v2185_v7 = vadd.f32 %v2184_v56, %v2171_v5 }
 0x442   : > { %v2250_v9 = vrot.slane %v2185_v7, 4 }
 0x444   : > { %v2254_v15 = vsel %vm986_vm2, %v2159_v8, %v2250_v9 }
 0x445   : > { %2262 = vst [vmem:[%s3794_s23 + $0x10] sm:$0x77] %v2254_v15 }
 0x447   : > { %v2173_v16 = vpop.f32.mrf.mxu2  ;;  %v2186_v17 = vpop.f32.mrf.mxu3 }
 0x456   : > { %v2197_v18 = vpop.f32.mrf.mxu0  ;;  %v2210_v19 = vpop.f32.mrf.mxu1 }
 0x457   : > { %v2211_v28 = vadd.f32 %v2210_v19, %v2197_v18 }
 0x45d   : > { %v2223_v41 = vpop.f32.mrf.mxu2  ;;  %v2236_v40 = vpop.f32.mrf.mxu3 }
 0x45e   : > { %v2237_v42 = vadd.f32 %v2236_v40, %v2223_v41  ;;  %v2199_v22 = vpop.f32.mrf.mxu0  ;;  %v2212_v23 = vpop.f32.mrf.mxu1 }
 0x460   : > { %v2251_v29 = vrot.slane %v2237_v42, 4 }
 0x462   : > { %v2255_v30 = vsel %vm986_vm2, %v2211_v28, %v2251_v29 }
 0x463   : > { %2263 = vst [vmem:[%s3794_s23 + $0x18] sm:$0x77] %v2255_v30 }
 0x465   : > { %v2225_v31 = vpop.f32.mrf.mxu2  ;;  %v2238_v32 = vpop.f32.mrf.mxu3 }
 0x466 PF: > { %s31_s0 = sadd.s32 1, %s3241_s0  }
 0x467   : > { %p28_p7 = scmp.ge.s32.totalorder %s31_s0, 4  }
 0x469   :  { %30 = sbr.rel (!%p28_p7) target bundleno = 7 (0x7), region = 167 }
 0x46e   :  { %2301 = vsyncpa [#allocation3], 1 }
 0x46f   :  { %2303 = vsyncpa [#allocation3 + $0x1], 1 }

</bundles_post_ra>
